<compile_context>
chip_gen: v7x
topology: tpu7x:2x2x1
jax: 0.10.0
libtpu: 0.0.40
codegen_flags: <defaults>
</compile_context>

<pallas_src>
import math

import numpy as np
import jax
import jax.numpy as jnp
from jax.experimental import pallas as pl
from jax.experimental.pallas import tpu as pltpu

# ---------------- model hyper-params (small, consistent with the module) -----
BATCH = 2
SEQ = 8
D_MODEL = 32
NHEAD = 4
HEAD_DIM = D_MODEL // NHEAD
DIM_FF = 64
NUM_LAYERS = 2
LN_EPS = 1e-6
GN_EPS = 1e-6

BS = BATCH * SEQ          # 16  (flattened batch*seq rows)
PROJ = 4 * D_MODEL        # 128 (q|k|v|g packed along lanes)

# ---- "wide" constant slab (width 128), row offsets are multiples of 8 -------
R_WQKVG = 0                       # (32, 128)  [wq | wk | wv | wg]
R_ROT   = R_WQKVG + D_MODEL       # (128,128)  block-diag pair-swap (q,k lanes)
R_CS    = R_ROT + PROJ            # (16, 128)  fused cos / scale constants
R_SIN   = R_CS + BS               # (16, 128)  fused sin / scale constants
R_VEC   = R_SIN + BS              # row0: ln1_w|ln1_b|ln2_w|ln2_b
                                  # row1: bq|bk|bv|bg     row2: bo|b1|b2
R_WIDE  = R_VEC + 8               # 200 rows total

# ---- "small" constant slab (width 64) ----------------------------------------
SM_W   = 64
R_WO   = 0                        # (32, 32)  at cols 0:32
R_W1   = 32                       # (32, 64)  at cols 0:64
R_W2   = 64                       # (64, 32)  at cols 0:32
R_DEC  = 128                      # (H*BS,BS) at cols 0:16  (block-diag decay)
R_SMALL = R_DEC + NHEAD * BS      # 192 rows total


# ---------------- in-kernel helpers ------------------------------------------
def _layer_norm(x, w, b):
    m = jnp.mean(x, axis=-1, keepdims=True)
    v = jnp.mean((x - m) ** 2, axis=-1, keepdims=True)
    return (x - m) * jax.lax.rsqrt(v + LN_EPS) * w + b


def _silu(x):
    return x * (1.0 / (1.0 + jnp.exp(-x)))


# ---------------- the fused RetNet decoder kernel (all layers, all batches) ---
def retnet_decoder_kernel(x_ref, wide_ref, small_ref, out_ref):
    D, H, DH, FF = D_MODEL, NHEAD, HEAD_DIM, DIM_FF

    # ---- unpack the two constant slabs with static, sublane-aligned slices ----
    w_qkvg = wide_ref[R_WQKVG:R_WQKVG + D, :]          # (32, 128)
    rot    = wide_ref[R_ROT:R_ROT + PROJ, :]           # (128, 128)
    cs_cos = wide_ref[R_CS:R_CS + BS, :]               # (16, 128)
    cs_sin = wide_ref[R_SIN:R_SIN + BS, :]             # (16, 128)
    vecs   = wide_ref[R_VEC:R_VEC + 8, :]              # (8, 128)

    ln1_w = vecs[0:1, 0:D]
    ln1_b = vecs[0:1, D:2 * D]
    ln2_w = vecs[0:1, 2 * D:3 * D]
    ln2_b = vecs[0:1, 3 * D:4 * D]
    b_qkvg = vecs[1:2, :]                              # (1, 128)
    bo = vecs[2:3, 0:D]                                # (1, 32)
    b1 = vecs[2:3, D:D + FF]                           # (1, 64)
    b2 = vecs[2:3, D + FF:D + FF + D]                  # (1, 32)

    sm = small_ref[...]                                # (192, 64)
    wo = sm[R_WO:R_WO + D, 0:D]                        # (32, 32)
    w1 = sm[R_W1:R_W1 + D, 0:FF]                       # (32, 64)
    w2 = sm[R_W2:R_W2 + FF, 0:D]                       # (64, 32)

    x = x_ref[...]                                     # (B*S, D) = (16, 32)

    # RetNetDecoder deep-copies one layer -> all layers share identical weights,
    # so a static loop over the same refs is exact.
    for _ in range(NUM_LAYERS):
        # -------- MultiScaleRetention block (norm_first) --------
        hpre = _layer_norm(x, ln1_w, ln1_b)
        proj = jnp.dot(hpre, w_qkvg, preferred_element_type=jnp.float32) + b_qkvg  # (16,128)

        # fused xpos rotation: q,k lanes get x*cos + rotate_every_two(x)*sin
        # (k lanes additionally carry the 1/sqrt(head_dim) scale folded into
        #  cs_cos/cs_sin); v,g lanes pass through (cos=1, sin=0, rot block = 0).
        projr = (proj * cs_cos
                 + jnp.dot(proj, rot, preferred_element_type=jnp.float32) * cs_sin)

        gate = _silu(projr[:, 3 * D:4 * D])            # swish gate, (16, 32)

        # per-head decayed retention + group-norm; project each head through its
        # slice of W_o and accumulate (no concatenate).
        y = jnp.zeros((BS, D), jnp.float32)
        for h in range(H):                             # static loop, H = 4
            qh = projr[:, h * DH:(h + 1) * DH]                     # (16, 8)
            kh = projr[:, D + h * DH:D + (h + 1) * DH]             # (16, 8)
            vh = projr[:, 2 * D + h * DH:2 * D + (h + 1) * DH]     # (16, 8)

            sim = jax.lax.dot_general(qh, kh, (((1,), (1,)), ((), ())),
                                      preferred_element_type=jnp.float32)  # (16,16)
            sim = sim * sm[R_DEC + h * BS:R_DEC + (h + 1) * BS, 0:BS]
            rh = jnp.dot(sim, vh, preferred_element_type=jnp.float32)      # (16, 8)

            m = jnp.mean(rh, axis=-1, keepdims=True)
            var = jnp.mean((rh - m) ** 2, axis=-1, keepdims=True)
            rh = (rh - m) * jax.lax.rsqrt(var + GN_EPS)

            rh = rh * gate[:, h * DH:(h + 1) * DH]
            y = y + jnp.dot(rh, wo[h * DH:(h + 1) * DH, :],
                            preferred_element_type=jnp.float32)            # (16, 32)

        x = x + y + bo                                  # residual

        # -------- feed-forward block (norm_first) --------
        h2 = _layer_norm(x, ln2_w, ln2_b)
        ff = _silu(jnp.dot(h2, w1, preferred_element_type=jnp.float32) + b1)
        ff = jnp.dot(ff, w2, preferred_element_type=jnp.float32) + b2
        x = x + ff

    out_ref[...] = x


# ---------------- wrapper -----------------------------------------------------
def retnet_decoder_pallas(x, wide, small):
    B, S, D = x.shape
    x2 = x.reshape(B * S, D)
    out2 = pl.pallas_call(
        retnet_decoder_kernel,
        out_shape=jax.ShapeDtypeStruct((B * S, D), x.dtype),
        in_specs=[pl.BlockSpec(memory_space=pltpu.MemorySpace.VMEM)] * 3,
        out_specs=pl.BlockSpec(memory_space=pltpu.MemorySpace.VMEM),
    )(x2, wide, small)
    return out2.reshape(B, S, D)


# ---------------- deterministic parameter / constant construction ------------
def make_params(key):
    def xavier(k, fan_in, fan_out):
        std = math.sqrt(2.0 / (fan_in + fan_out))
        return jax.random.normal(k, (fan_in, fan_out), jnp.float32) * std

    ks = jax.random.split(key, 7)
    return {
        # LayerNorms: PyTorch default init (weight=1, bias=0)
        "ln1_w": jnp.ones((D_MODEL,), jnp.float32), "ln1_b": jnp.zeros((D_MODEL,), jnp.float32),
        "ln2_w": jnp.ones((D_MODEL,), jnp.float32), "ln2_b": jnp.zeros((D_MODEL,), jnp.float32),
        # Retention projections: xavier_normal weight, zero bias
        "wq": xavier(ks[0], D_MODEL, D_MODEL), "bq": jnp.zeros((D_MODEL,), jnp.float32),
        "wk": xavier(ks[1], D_MODEL, D_MODEL), "bk": jnp.zeros((D_MODEL,), jnp.float32),
        "wv": xavier(ks[2], D_MODEL, D_MODEL), "bv": jnp.zeros((D_MODEL,), jnp.float32),
        "wg": xavier(ks[3], D_MODEL, D_MODEL), "bg": jnp.zeros((D_MODEL,), jnp.float32),
        "wo": xavier(ks[4], D_MODEL, D_MODEL), "bo": jnp.zeros((D_MODEL,), jnp.float32),
        # Feed-forward: xavier_normal weight, zero bias
        "w1": xavier(ks[5], D_MODEL, DIM_FF), "b1": jnp.zeros((DIM_FF,), jnp.float32),
        "w2": xavier(ks[6], DIM_FF, D_MODEL), "b2": jnp.zeros((D_MODEL,), jnp.float32),
    }


def make_consts():
    # xpos / RoPE-style thetas (per head-dim, duplicated pairwise; same per head)
    thetas = 1.0 / (10000.0 ** (np.arange(0, HEAD_DIM, 2, dtype=np.float64) / HEAD_DIM))
    thetas = np.repeat(thetas, 2)                      # (HEAD_DIM,)
    thetas_full = np.tile(thetas, NHEAD)               # (D,)
    pos = np.arange(SEQ, dtype=np.float64)[:, None]
    ang = pos * thetas_full[None, :]                   # (S, D)
    sin = np.sin(ang).astype(np.float32)
    cos = np.cos(ang).astype(np.float32)

    # per-head decay mask: gamma_h ** (i-j) for j <= i, else 0
    gammas = 1.0 - np.exp(np.linspace(math.log(1 / 32), math.log(1 / 512), NHEAD))
    ii = np.arange(SEQ)[:, None]
    jj = np.arange(SEQ)[None, :]
    dist = np.abs(ii - jj).astype(np.float64)
    causal = jj <= ii
    decay_sxs = np.where(causal[None], gammas[:, None, None] ** dist[None], 0.0)
    decay_sxs = decay_sxs.astype(np.float32)           # (H, S, S)

    return {"sin": jnp.asarray(sin), "cos": jnp.asarray(cos),
            "decay_sxs": jnp.asarray(decay_sxs)}


def pack_slabs(params, consts):
    """Pack all weights / biases / constants into two f32 slabs."""
    D, H, S, B, FF = D_MODEL, NHEAD, SEQ, BATCH, DIM_FF
    p = {k: np.asarray(v, np.float32) for k, v in params.items()}
    sin = np.asarray(consts["sin"], np.float32)
    cos = np.asarray(consts["cos"], np.float32)
    decay_sxs = np.asarray(consts["decay_sxs"], np.float32)
    inv = np.float32(1.0 / math.sqrt(HEAD_DIM))

    # ---- wide slab (R_WIDE, 128) ----
    wide = np.zeros((R_WIDE, PROJ), np.float32)
    wide[R_WQKVG:R_WQKVG + D, :] = np.concatenate(
        [p["wq"], p["wk"], p["wv"], p["wg"]], axis=1)

    # pair-swap: (x @ R)[2i] = -x[2i+1], (x @ R)[2i+1] = x[2i]; applied to q,k lanes
    pairswap = np.zeros((D, D), np.float32)
    for i in range(D // 2):
        pairswap[2 * i + 1, 2 * i] = -1.0
        pairswap[2 * i, 2 * i + 1] = 1.0
    rot = np.zeros((PROJ, PROJ), np.float32)
    rot[0:D, 0:D] = pairswap
    rot[D:2 * D, D:2 * D] = pairswap
    wide[R_ROT:R_ROT + PROJ, :] = rot

    ones = np.ones((S, D), np.float32)
    zeros = np.zeros((S, D), np.float32)
    cs_cos = np.concatenate([cos, cos * inv, ones, ones], axis=1)    # (S, 128)
    cs_sin = np.concatenate([sin, sin * inv, zeros, zeros], axis=1)  # (S, 128)
    wide[R_CS:R_CS + B * S, :] = np.tile(cs_cos, (B, 1))
    wide[R_SIN:R_SIN + B * S, :] = np.tile(cs_sin, (B, 1))

    wide[R_VEC, 0:D] = p["ln1_w"]
    wide[R_VEC, D:2 * D] = p["ln1_b"]
    wide[R_VEC, 2 * D:3 * D] = p["ln2_w"]
    wide[R_VEC, 3 * D:4 * D] = p["ln2_b"]
    wide[R_VEC + 1, :] = np.concatenate([p["bq"], p["bk"], p["bv"], p["bg"]])
    wide[R_VEC + 2, 0:D] = p["bo"]
    wide[R_VEC + 2, D:D + FF] = p["b1"]
    wide[R_VEC + 2, D + FF:D + FF + D] = p["b2"]

    # ---- small slab (R_SMALL, 64) ----
    small = np.zeros((R_SMALL, SM_W), np.float32)
    small[R_WO:R_WO + D, 0:D] = p["wo"]
    small[R_W1:R_W1 + D, 0:FF] = p["w1"]
    small[R_W2:R_W2 + FF, 0:D] = p["w2"]
    # block-diagonal (per-batch) causal decay mask over the flattened B*S rows
    decay_full = np.zeros((H, B * S, B * S), np.float32)
    for b in range(B):
        decay_full[:, b * S:(b + 1) * S, b * S:(b + 1) * S] = decay_sxs
    small[R_DEC:R_DEC + H * B * S, 0:B * S] = decay_full.reshape(H * B * S, B * S)

    return jnp.asarray(wide), jnp.asarray(small)


# ---------------- pure-JAX reference (mirrors the PyTorch forward) -----------
def ref_layer(x, p, c):
    def ln(z, w, b):
        m = z.mean(-1, keepdims=True)
        v = ((z - m) ** 2).mean(-1, keepdims=True)
        return (z - m) * jax.lax.rsqrt(v + LN_EPS) * w + b

    def silu(z):
        return z * jax.nn.sigmoid(z)

    def rot2(z):
        z1 = z[..., 0::2]
        z2 = z[..., 1::2]
        return jnp.stack((-z2, z1), axis=-1).reshape(z.shape)

    B, S, D = x.shape
    h = ln(x, p["ln1_w"], p["ln1_b"])
    q = h @ p["wq"] + p["bq"]
    k = h @ p["wk"] + p["bk"]
    v = h @ p["wv"] + p["bv"]
    g = h @ p["wg"] + p["bg"]

    sin = c["sin"][None]   # (1, S, D)
    cos = c["cos"][None]
    q = q * cos + rot2(q) * sin
    k = (k * cos + rot2(k) * sin) * (1.0 / math.sqrt(HEAD_DIM))

    def heads(z):
        return z.reshape(B, S, NHEAD, HEAD_DIM).transpose(0, 2, 1, 3)

    qh, kh, vh = heads(q), heads(k), heads(v)
    sim = jnp.einsum("bhnd,bhmd->bhnm", qh, kh) * c["decay_sxs"][None]
    ret = jnp.einsum("bhnm,bhmd->bhnd", sim, vh)
    m = ret.mean(-1, keepdims=True)
    var = ((ret - m) ** 2).mean(-1, keepdims=True)
    ret = (ret - m) * jax.lax.rsqrt(var + GN_EPS)
    ret = ret.transpose(0, 2, 1, 3).reshape(B, S, D)

    x1 = x + (ret * silu(g)) @ p["wo"] + p["bo"]

    h2 = ln(x1, p["ln2_w"], p["ln2_b"])
    ff = silu(h2 @ p["w1"] + p["b1"]) @ p["w2"] + p["b2"]
    return x1 + ff


def ref_decoder(x, p, c, num_layers=NUM_LAYERS):
    for _ in range(num_layers):
        x = ref_layer(x, p, c)
    return x


# ---------------- main --------------------------------------------------------
if __name__ == "__main__":
    key = jax.random.PRNGKey(0)
    k_x, k_p = jax.random.split(key)
    x = jax.random.normal(k_x, (BATCH, SEQ, D_MODEL), jnp.float32)

    params = make_params(k_p)
    consts = make_consts()
    wide, small = pack_slabs(params, consts)

    out = jax.block_until_ready(retnet_decoder_pallas(x, wide, small))

    expected = jax.block_until_ready(ref_decoder(x, params, consts))
    np.testing.assert_allclose(np.asarray(out), np.asarray(expected),
                               rtol=1e-4, atol=1e-5)

    print("KERNEL_OK")
</pallas_src>

<mosaic_0001>
module attributes {stable_mosaic.version = 11 : i64} {
  func.func @retnet_decoder_kernel(%arg0: memref<16x32xf32, #tpu.memory_space<vmem>>, %arg1: memref<200x128xf32, #tpu.memory_space<vmem>>, %arg2: memref<192x64xf32, #tpu.memory_space<vmem>>, %arg3: memref<16x32xf32, #tpu.memory_space<vmem>>) attributes {dimension_semantics = [], scalar_prefetch = 0 : i64, scratch_operands = 0 : i64, tpu.core_type = #tpu.core_type<tc>} {
    %c0 = arith.constant 0 : index
    %c0_0 = arith.constant 0 : index
    %0 = vector.load %arg1[%c0, %c0_0] : memref<200x128xf32, #tpu.memory_space<vmem>>, vector<32x128xf32>
    %c32 = arith.constant 32 : index
    %c0_1 = arith.constant 0 : index
    %1 = vector.load %arg1[%c32, %c0_1] : memref<200x128xf32, #tpu.memory_space<vmem>>, vector<128x128xf32>
    %c160 = arith.constant 160 : index
    %c0_2 = arith.constant 0 : index
    %2 = vector.load %arg1[%c160, %c0_2] : memref<200x128xf32, #tpu.memory_space<vmem>>, vector<16x128xf32>
    %c176 = arith.constant 176 : index
    %c0_3 = arith.constant 0 : index
    %3 = vector.load %arg1[%c176, %c0_3] : memref<200x128xf32, #tpu.memory_space<vmem>>, vector<16x128xf32>
    %c192 = arith.constant 192 : index
    %c0_4 = arith.constant 0 : index
    %4 = vector.load %arg1[%c192, %c0_4] : memref<200x128xf32, #tpu.memory_space<vmem>>, vector<8x128xf32>
    %5 = vector.extract_strided_slice %4 {offsets = [0, 0], sizes = [1, 32], strides = [1, 1]} : vector<8x128xf32> to vector<1x32xf32>
    %6 = vector.extract_strided_slice %4 {offsets = [0, 32], sizes = [1, 32], strides = [1, 1]} : vector<8x128xf32> to vector<1x32xf32>
    %7 = vector.extract_strided_slice %4 {offsets = [0, 64], sizes = [1, 32], strides = [1, 1]} : vector<8x128xf32> to vector<1x32xf32>
    %8 = vector.extract_strided_slice %4 {offsets = [0, 96], sizes = [1, 32], strides = [1, 1]} : vector<8x128xf32> to vector<1x32xf32>
    %9 = vector.extract_strided_slice %4 {offsets = [1, 0], sizes = [1, 128], strides = [1, 1]} : vector<8x128xf32> to vector<1x128xf32>
    %10 = vector.extract_strided_slice %4 {offsets = [2, 0], sizes = [1, 32], strides = [1, 1]} : vector<8x128xf32> to vector<1x32xf32>
    %11 = vector.extract_strided_slice %4 {offsets = [2, 32], sizes = [1, 64], strides = [1, 1]} : vector<8x128xf32> to vector<1x64xf32>
    %12 = vector.extract_strided_slice %4 {offsets = [2, 96], sizes = [1, 32], strides = [1, 1]} : vector<8x128xf32> to vector<1x32xf32>
    %c0_5 = arith.constant 0 : index
    %c0_6 = arith.constant 0 : index
    %13 = vector.load %arg2[%c0_5, %c0_6] : memref<192x64xf32, #tpu.memory_space<vmem>>, vector<192x64xf32>
    %14 = vector.extract_strided_slice %13 {offsets = [0, 0], sizes = [32, 32], strides = [1, 1]} : vector<192x64xf32> to vector<32x32xf32>
    %15 = vector.extract_strided_slice %13 {offsets = [32, 0], sizes = [32, 64], strides = [1, 1]} : vector<192x64xf32> to vector<32x64xf32>
    %16 = vector.extract_strided_slice %13 {offsets = [64, 0], sizes = [64, 32], strides = [1, 1]} : vector<192x64xf32> to vector<64x32xf32>
    %c0_7 = arith.constant 0 : index
    %c0_8 = arith.constant 0 : index
    %17 = vector.load %arg0[%c0_7, %c0_8] : memref<16x32xf32, #tpu.memory_space<vmem>>, vector<16x32xf32>
    %cst = arith.constant dense<0.000000e+00> : vector<16xf32>
    %18 = vector.multi_reduction <add>, %17, %cst [1] : vector<16x32xf32> to vector<16xf32>
    %19 = vector.shape_cast %18 : vector<16xf32> to vector<16x1xf32>
    %cst_9 = arith.constant 3.200000e+01 : f32
    %20 = vector.broadcast %cst_9 : f32 to vector<16x1xf32>
    %21 = arith.divf %19, %20 : vector<16x1xf32>
    %22 = vector.broadcast %21 : vector<16x1xf32> to vector<16x32xf32>
    %23 = arith.subf %17, %22 : vector<16x32xf32>
    %24 = arith.mulf %23, %23 : vector<16x32xf32>
    %cst_10 = arith.constant dense<0.000000e+00> : vector<16xf32>
    %25 = vector.multi_reduction <add>, %24, %cst_10 [1] : vector<16x32xf32> to vector<16xf32>
    %26 = vector.shape_cast %25 : vector<16xf32> to vector<16x1xf32>
    %cst_11 = arith.constant 3.200000e+01 : f32
    %27 = vector.broadcast %cst_11 : f32 to vector<16x1xf32>
    %28 = arith.divf %26, %27 : vector<16x1xf32>
    %29 = vector.broadcast %21 : vector<16x1xf32> to vector<16x32xf32>
    %30 = arith.subf %17, %29 : vector<16x32xf32>
    %cst_12 = arith.constant 9.99999997E-7 : f32
    %31 = vector.broadcast %cst_12 : f32 to vector<16x1xf32>
    %32 = arith.addf %28, %31 : vector<16x1xf32>
    %33 = math.rsqrt %32 : vector<16x1xf32>
    %34 = vector.broadcast %33 : vector<16x1xf32> to vector<16x32xf32>
    %35 = arith.mulf %30, %34 : vector<16x32xf32>
    %36 = vector.broadcast %5 : vector<1x32xf32> to vector<16x32xf32>
    %37 = arith.mulf %35, %36 : vector<16x32xf32>
    %38 = vector.broadcast %6 : vector<1x32xf32> to vector<16x32xf32>
    %39 = arith.addf %37, %38 : vector<16x32xf32>
    %cst_13 = arith.constant dense<0.000000e+00> : vector<16x128xf32>
    %40 = tpu.matmul %39, %0, %cst_13 {dimension_numbers = #tpu.dot_dimension_numbers<[1], [0], [0], [1], [0, 0, 1, 1], [], []>} : vector<16x32xf32>, vector<32x128xf32>, vector<16x128xf32> -> vector<16x128xf32>
    %41 = vector.broadcast %9 : vector<1x128xf32> to vector<16x128xf32>
    %42 = arith.addf %40, %41 : vector<16x128xf32>
    %43 = arith.mulf %42, %2 : vector<16x128xf32>
    %cst_14 = arith.constant dense<0.000000e+00> : vector<16x128xf32>
    %44 = tpu.matmul %42, %1, %cst_14 {dimension_numbers = #tpu.dot_dimension_numbers<[1], [0], [0], [1], [0, 0, 1, 1], [], []>} : vector<16x128xf32>, vector<128x128xf32>, vector<16x128xf32> -> vector<16x128xf32>
    %45 = arith.mulf %44, %3 : vector<16x128xf32>
    %46 = arith.addf %43, %45 : vector<16x128xf32>
    %47 = vector.extract_strided_slice %46 {offsets = [0, 96], sizes = [16, 32], strides = [1, 1]} : vector<16x128xf32> to vector<16x32xf32>
    %cst_15 = arith.constant 0.000000e+00 : f32
    %48 = vector.broadcast %cst_15 : f32 to vector<16x32xf32>
    %49 = arith.subf %48, %47 : vector<16x32xf32>
    %50 = math.exp %49 : vector<16x32xf32>
    %cst_16 = arith.constant 1.000000e+00 : f32
    %51 = vector.broadcast %cst_16 : f32 to vector<16x32xf32>
    %52 = arith.addf %51, %50 : vector<16x32xf32>
    %cst_17 = arith.constant 1.000000e+00 : f32
    %53 = vector.broadcast %cst_17 : f32 to vector<16x32xf32>
    %54 = arith.divf %53, %52 : vector<16x32xf32>
    %55 = arith.mulf %47, %54 : vector<16x32xf32>
    %cst_18 = arith.constant 0.000000e+00 : f32
    %56 = vector.broadcast %cst_18 : f32 to vector<16x32xf32>
    %57 = vector.extract_strided_slice %46 {offsets = [0, 0], sizes = [16, 8], strides = [1, 1]} : vector<16x128xf32> to vector<16x8xf32>
    %58 = vector.extract_strided_slice %46 {offsets = [0, 32], sizes = [16, 8], strides = [1, 1]} : vector<16x128xf32> to vector<16x8xf32>
    %59 = vector.extract_strided_slice %46 {offsets = [0, 64], sizes = [16, 8], strides = [1, 1]} : vector<16x128xf32> to vector<16x8xf32>
    %cst_19 = arith.constant dense<0.000000e+00> : vector<16x16xf32>
    %60 = tpu.matmul %57, %58, %cst_19 {dimension_numbers = #tpu.dot_dimension_numbers<[1], [1], [0], [0], [0, 0, 1, 0], [], []>} : vector<16x8xf32>, vector<16x8xf32>, vector<16x16xf32> -> vector<16x16xf32>
    %61 = vector.extract_strided_slice %13 {offsets = [128, 0], sizes = [16, 16], strides = [1, 1]} : vector<192x64xf32> to vector<16x16xf32>
    %62 = arith.mulf %60, %61 : vector<16x16xf32>
    %cst_20 = arith.constant dense<0.000000e+00> : vector<16x8xf32>
    %63 = tpu.matmul %62, %59, %cst_20 {dimension_numbers = #tpu.dot_dimension_numbers<[1], [0], [0], [1], [0, 0, 1, 1], [], []>} : vector<16x16xf32>, vector<16x8xf32>, vector<16x8xf32> -> vector<16x8xf32>
    %cst_21 = arith.constant dense<0.000000e+00> : vector<16xf32>
    %64 = vector.multi_reduction <add>, %63, %cst_21 [1] : vector<16x8xf32> to vector<16xf32>
    %65 = vector.shape_cast %64 : vector<16xf32> to vector<16x1xf32>
    %cst_22 = arith.constant 8.000000e+00 : f32
    %66 = vector.broadcast %cst_22 : f32 to vector<16x1xf32>
    %67 = arith.divf %65, %66 : vector<16x1xf32>
    %68 = vector.broadcast %67 : vector<16x1xf32> to vector<16x8xf32>
    %69 = arith.subf %63, %68 : vector<16x8xf32>
    %70 = arith.mulf %69, %69 : vector<16x8xf32>
    %cst_23 = arith.constant dense<0.000000e+00> : vector<16xf32>
    %71 = vector.multi_reduction <add>, %70, %cst_23 [1] : vector<16x8xf32> to vector<16xf32>
    %72 = vector.shape_cast %71 : vector<16xf32> to vector<16x1xf32>
    %cst_24 = arith.constant 8.000000e+00 : f32
    %73 = vector.broadcast %cst_24 : f32 to vector<16x1xf32>
    %74 = arith.divf %72, %73 : vector<16x1xf32>
    %75 = vector.broadcast %67 : vector<16x1xf32> to vector<16x8xf32>
    %76 = arith.subf %63, %75 : vector<16x8xf32>
    %cst_25 = arith.constant 9.99999997E-7 : f32
    %77 = vector.broadcast %cst_25 : f32 to vector<16x1xf32>
    %78 = arith.addf %74, %77 : vector<16x1xf32>
    %79 = math.rsqrt %78 : vector<16x1xf32>
    %80 = vector.broadcast %79 : vector<16x1xf32> to vector<16x8xf32>
    %81 = arith.mulf %76, %80 : vector<16x8xf32>
    %82 = vector.extract_strided_slice %55 {offsets = [0, 0], sizes = [16, 8], strides = [1, 1]} : vector<16x32xf32> to vector<16x8xf32>
    %83 = arith.mulf %81, %82 : vector<16x8xf32>
    %84 = vector.extract_strided_slice %14 {offsets = [0, 0], sizes = [8, 32], strides = [1, 1]} : vector<32x32xf32> to vector<8x32xf32>
    %cst_26 = arith.constant dense<0.000000e+00> : vector<16x32xf32>
    %85 = tpu.matmul %83, %84, %cst_26 {dimension_numbers = #tpu.dot_dimension_numbers<[1], [0], [0], [1], [0, 0, 1, 1], [], []>} : vector<16x8xf32>, vector<8x32xf32>, vector<16x32xf32> -> vector<16x32xf32>
    %86 = arith.addf %56, %85 : vector<16x32xf32>
    %87 = vector.extract_strided_slice %46 {offsets = [0, 8], sizes = [16, 8], strides = [1, 1]} : vector<16x128xf32> to vector<16x8xf32>
    %88 = vector.extract_strided_slice %46 {offsets = [0, 40], sizes = [16, 8], strides = [1, 1]} : vector<16x128xf32> to vector<16x8xf32>
    %89 = vector.extract_strided_slice %46 {offsets = [0, 72], sizes = [16, 8], strides = [1, 1]} : vector<16x128xf32> to vector<16x8xf32>
    %cst_27 = arith.constant dense<0.000000e+00> : vector<16x16xf32>
    %90 = tpu.matmul %87, %88, %cst_27 {dimension_numbers = #tpu.dot_dimension_numbers<[1], [1], [0], [0], [0, 0, 1, 0], [], []>} : vector<16x8xf32>, vector<16x8xf32>, vector<16x16xf32> -> vector<16x16xf32>
    %91 = vector.extract_strided_slice %13 {offsets = [144, 0], sizes = [16, 16], strides = [1, 1]} : vector<192x64xf32> to vector<16x16xf32>
    %92 = arith.mulf %90, %91 : vector<16x16xf32>
    %cst_28 = arith.constant dense<0.000000e+00> : vector<16x8xf32>
    %93 = tpu.matmul %92, %89, %cst_28 {dimension_numbers = #tpu.dot_dimension_numbers<[1], [0], [0], [1], [0, 0, 1, 1], [], []>} : vector<16x16xf32>, vector<16x8xf32>, vector<16x8xf32> -> vector<16x8xf32>
    %cst_29 = arith.constant dense<0.000000e+00> : vector<16xf32>
    %94 = vector.multi_reduction <add>, %93, %cst_29 [1] : vector<16x8xf32> to vector<16xf32>
    %95 = vector.shape_cast %94 : vector<16xf32> to vector<16x1xf32>
    %cst_30 = arith.constant 8.000000e+00 : f32
    %96 = vector.broadcast %cst_30 : f32 to vector<16x1xf32>
    %97 = arith.divf %95, %96 : vector<16x1xf32>
    %98 = vector.broadcast %97 : vector<16x1xf32> to vector<16x8xf32>
    %99 = arith.subf %93, %98 : vector<16x8xf32>
    %100 = arith.mulf %99, %99 : vector<16x8xf32>
    %cst_31 = arith.constant dense<0.000000e+00> : vector<16xf32>
    %101 = vector.multi_reduction <add>, %100, %cst_31 [1] : vector<16x8xf32> to vector<16xf32>
    %102 = vector.shape_cast %101 : vector<16xf32> to vector<16x1xf32>
    %cst_32 = arith.constant 8.000000e+00 : f32
    %103 = vector.broadcast %cst_32 : f32 to vector<16x1xf32>
    %104 = arith.divf %102, %103 : vector<16x1xf32>
    %105 = vector.broadcast %97 : vector<16x1xf32> to vector<16x8xf32>
    %106 = arith.subf %93, %105 : vector<16x8xf32>
    %cst_33 = arith.constant 9.99999997E-7 : f32
    %107 = vector.broadcast %cst_33 : f32 to vector<16x1xf32>
    %108 = arith.addf %104, %107 : vector<16x1xf32>
    %109 = math.rsqrt %108 : vector<16x1xf32>
    %110 = vector.broadcast %109 : vector<16x1xf32> to vector<16x8xf32>
    %111 = arith.mulf %106, %110 : vector<16x8xf32>
    %112 = vector.extract_strided_slice %55 {offsets = [0, 8], sizes = [16, 8], strides = [1, 1]} : vector<16x32xf32> to vector<16x8xf32>
    %113 = arith.mulf %111, %112 : vector<16x8xf32>
    %114 = vector.extract_strided_slice %14 {offsets = [8, 0], sizes = [8, 32], strides = [1, 1]} : vector<32x32xf32> to vector<8x32xf32>
    %cst_34 = arith.constant dense<0.000000e+00> : vector<16x32xf32>
    %115 = tpu.matmul %113, %114, %cst_34 {dimension_numbers = #tpu.dot_dimension_numbers<[1], [0], [0], [1], [0, 0, 1, 1], [], []>} : vector<16x8xf32>, vector<8x32xf32>, vector<16x32xf32> -> vector<16x32xf32>
    %116 = arith.addf %86, %115 : vector<16x32xf32>
    %117 = vector.extract_strided_slice %46 {offsets = [0, 16], sizes = [16, 8], strides = [1, 1]} : vector<16x128xf32> to vector<16x8xf32>
    %118 = vector.extract_strided_slice %46 {offsets = [0, 48], sizes = [16, 8], strides = [1, 1]} : vector<16x128xf32> to vector<16x8xf32>
    %119 = vector.extract_strided_slice %46 {offsets = [0, 80], sizes = [16, 8], strides = [1, 1]} : vector<16x128xf32> to vector<16x8xf32>
    %cst_35 = arith.constant dense<0.000000e+00> : vector<16x16xf32>
    %120 = tpu.matmul %117, %118, %cst_35 {dimension_numbers = #tpu.dot_dimension_numbers<[1], [1], [0], [0], [0, 0, 1, 0], [], []>} : vector<16x8xf32>, vector<16x8xf32>, vector<16x16xf32> -> vector<16x16xf32>
    %121 = vector.extract_strided_slice %13 {offsets = [160, 0], sizes = [16, 16], strides = [1, 1]} : vector<192x64xf32> to vector<16x16xf32>
    %122 = arith.mulf %120, %121 : vector<16x16xf32>
    %cst_36 = arith.constant dense<0.000000e+00> : vector<16x8xf32>
    %123 = tpu.matmul %122, %119, %cst_36 {dimension_numbers = #tpu.dot_dimension_numbers<[1], [0], [0], [1], [0, 0, 1, 1], [], []>} : vector<16x16xf32>, vector<16x8xf32>, vector<16x8xf32> -> vector<16x8xf32>
    %cst_37 = arith.constant dense<0.000000e+00> : vector<16xf32>
    %124 = vector.multi_reduction <add>, %123, %cst_37 [1] : vector<16x8xf32> to vector<16xf32>
    %125 = vector.shape_cast %124 : vector<16xf32> to vector<16x1xf32>
    %cst_38 = arith.constant 8.000000e+00 : f32
    %126 = vector.broadcast %cst_38 : f32 to vector<16x1xf32>
    %127 = arith.divf %125, %126 : vector<16x1xf32>
    %128 = vector.broadcast %127 : vector<16x1xf32> to vector<16x8xf32>
    %129 = arith.subf %123, %128 : vector<16x8xf32>
    %130 = arith.mulf %129, %129 : vector<16x8xf32>
    %cst_39 = arith.constant dense<0.000000e+00> : vector<16xf32>
    %131 = vector.multi_reduction <add>, %130, %cst_39 [1] : vector<16x8xf32> to vector<16xf32>
    %132 = vector.shape_cast %131 : vector<16xf32> to vector<16x1xf32>
    %cst_40 = arith.constant 8.000000e+00 : f32
    %133 = vector.broadcast %cst_40 : f32 to vector<16x1xf32>
    %134 = arith.divf %132, %133 : vector<16x1xf32>
    %135 = vector.broadcast %127 : vector<16x1xf32> to vector<16x8xf32>
    %136 = arith.subf %123, %135 : vector<16x8xf32>
    %cst_41 = arith.constant 9.99999997E-7 : f32
    %137 = vector.broadcast %cst_41 : f32 to vector<16x1xf32>
    %138 = arith.addf %134, %137 : vector<16x1xf32>
    %139 = math.rsqrt %138 : vector<16x1xf32>
    %140 = vector.broadcast %139 : vector<16x1xf32> to vector<16x8xf32>
    %141 = arith.mulf %136, %140 : vector<16x8xf32>
    %142 = vector.extract_strided_slice %55 {offsets = [0, 16], sizes = [16, 8], strides = [1, 1]} : vector<16x32xf32> to vector<16x8xf32>
    %143 = arith.mulf %141, %142 : vector<16x8xf32>
    %144 = vector.extract_strided_slice %14 {offsets = [16, 0], sizes = [8, 32], strides = [1, 1]} : vector<32x32xf32> to vector<8x32xf32>
    %cst_42 = arith.constant dense<0.000000e+00> : vector<16x32xf32>
    %145 = tpu.matmul %143, %144, %cst_42 {dimension_numbers = #tpu.dot_dimension_numbers<[1], [0], [0], [1], [0, 0, 1, 1], [], []>} : vector<16x8xf32>, vector<8x32xf32>, vector<16x32xf32> -> vector<16x32xf32>
    %146 = arith.addf %116, %145 : vector<16x32xf32>
    %147 = vector.extract_strided_slice %46 {offsets = [0, 24], sizes = [16, 8], strides = [1, 1]} : vector<16x128xf32> to vector<16x8xf32>
    %148 = vector.extract_strided_slice %46 {offsets = [0, 56], sizes = [16, 8], strides = [1, 1]} : vector<16x128xf32> to vector<16x8xf32>
    %149 = vector.extract_strided_slice %46 {offsets = [0, 88], sizes = [16, 8], strides = [1, 1]} : vector<16x128xf32> to vector<16x8xf32>
    %cst_43 = arith.constant dense<0.000000e+00> : vector<16x16xf32>
    %150 = tpu.matmul %147, %148, %cst_43 {dimension_numbers = #tpu.dot_dimension_numbers<[1], [1], [0], [0], [0, 0, 1, 0], [], []>} : vector<16x8xf32>, vector<16x8xf32>, vector<16x16xf32> -> vector<16x16xf32>
    %151 = vector.extract_strided_slice %13 {offsets = [176, 0], sizes = [16, 16], strides = [1, 1]} : vector<192x64xf32> to vector<16x16xf32>
    %152 = arith.mulf %150, %151 : vector<16x16xf32>
    %cst_44 = arith.constant dense<0.000000e+00> : vector<16x8xf32>
    %153 = tpu.matmul %152, %149, %cst_44 {dimension_numbers = #tpu.dot_dimension_numbers<[1], [0], [0], [1], [0, 0, 1, 1], [], []>} : vector<16x16xf32>, vector<16x8xf32>, vector<16x8xf32> -> vector<16x8xf32>
    %cst_45 = arith.constant dense<0.000000e+00> : vector<16xf32>
    %154 = vector.multi_reduction <add>, %153, %cst_45 [1] : vector<16x8xf32> to vector<16xf32>
    %155 = vector.shape_cast %154 : vector<16xf32> to vector<16x1xf32>
    %cst_46 = arith.constant 8.000000e+00 : f32
    %156 = vector.broadcast %cst_46 : f32 to vector<16x1xf32>
    %157 = arith.divf %155, %156 : vector<16x1xf32>
    %158 = vector.broadcast %157 : vector<16x1xf32> to vector<16x8xf32>
    %159 = arith.subf %153, %158 : vector<16x8xf32>
    %160 = arith.mulf %159, %159 : vector<16x8xf32>
    %cst_47 = arith.constant dense<0.000000e+00> : vector<16xf32>
    %161 = vector.multi_reduction <add>, %160, %cst_47 [1] : vector<16x8xf32> to vector<16xf32>
    %162 = vector.shape_cast %161 : vector<16xf32> to vector<16x1xf32>
    %cst_48 = arith.constant 8.000000e+00 : f32
    %163 = vector.broadcast %cst_48 : f32 to vector<16x1xf32>
    %164 = arith.divf %162, %163 : vector<16x1xf32>
    %165 = vector.broadcast %157 : vector<16x1xf32> to vector<16x8xf32>
    %166 = arith.subf %153, %165 : vector<16x8xf32>
    %cst_49 = arith.constant 9.99999997E-7 : f32
    %167 = vector.broadcast %cst_49 : f32 to vector<16x1xf32>
    %168 = arith.addf %164, %167 : vector<16x1xf32>
    %169 = math.rsqrt %168 : vector<16x1xf32>
    %170 = vector.broadcast %169 : vector<16x1xf32> to vector<16x8xf32>
    %171 = arith.mulf %166, %170 : vector<16x8xf32>
    %172 = vector.extract_strided_slice %55 {offsets = [0, 24], sizes = [16, 8], strides = [1, 1]} : vector<16x32xf32> to vector<16x8xf32>
    %173 = arith.mulf %171, %172 : vector<16x8xf32>
    %174 = vector.extract_strided_slice %14 {offsets = [24, 0], sizes = [8, 32], strides = [1, 1]} : vector<32x32xf32> to vector<8x32xf32>
    %cst_50 = arith.constant dense<0.000000e+00> : vector<16x32xf32>
    %175 = tpu.matmul %173, %174, %cst_50 {dimension_numbers = #tpu.dot_dimension_numbers<[1], [0], [0], [1], [0, 0, 1, 1], [], []>} : vector<16x8xf32>, vector<8x32xf32>, vector<16x32xf32> -> vector<16x32xf32>
    %176 = arith.addf %146, %175 : vector<16x32xf32>
    %177 = arith.addf %17, %176 : vector<16x32xf32>
    %178 = vector.broadcast %10 : vector<1x32xf32> to vector<16x32xf32>
    %179 = arith.addf %177, %178 : vector<16x32xf32>
    %cst_51 = arith.constant dense<0.000000e+00> : vector<16xf32>
    %180 = vector.multi_reduction <add>, %179, %cst_51 [1] : vector<16x32xf32> to vector<16xf32>
    %181 = vector.shape_cast %180 : vector<16xf32> to vector<16x1xf32>
    %cst_52 = arith.constant 3.200000e+01 : f32
    %182 = vector.broadcast %cst_52 : f32 to vector<16x1xf32>
    %183 = arith.divf %181, %182 : vector<16x1xf32>
    %184 = vector.broadcast %183 : vector<16x1xf32> to vector<16x32xf32>
    %185 = arith.subf %179, %184 : vector<16x32xf32>
    %186 = arith.mulf %185, %185 : vector<16x32xf32>
    %cst_53 = arith.constant dense<0.000000e+00> : vector<16xf32>
    %187 = vector.multi_reduction <add>, %186, %cst_53 [1] : vector<16x32xf32> to vector<16xf32>
    %188 = vector.shape_cast %187 : vector<16xf32> to vector<16x1xf32>
    %cst_54 = arith.constant 3.200000e+01 : f32
    %189 = vector.broadcast %cst_54 : f32 to vector<16x1xf32>
    %190 = arith.divf %188, %189 : vector<16x1xf32>
    %191 = vector.broadcast %183 : vector<16x1xf32> to vector<16x32xf32>
    %192 = arith.subf %179, %191 : vector<16x32xf32>
    %cst_55 = arith.constant 9.99999997E-7 : f32
    %193 = vector.broadcast %cst_55 : f32 to vector<16x1xf32>
    %194 = arith.addf %190, %193 : vector<16x1xf32>
    %195 = math.rsqrt %194 : vector<16x1xf32>
    %196 = vector.broadcast %195 : vector<16x1xf32> to vector<16x32xf32>
    %197 = arith.mulf %192, %196 : vector<16x32xf32>
    %198 = vector.broadcast %7 : vector<1x32xf32> to vector<16x32xf32>
    %199 = arith.mulf %197, %198 : vector<16x32xf32>
    %200 = vector.broadcast %8 : vector<1x32xf32> to vector<16x32xf32>
    %201 = arith.addf %199, %200 : vector<16x32xf32>
    %cst_56 = arith.constant dense<0.000000e+00> : vector<16x64xf32>
    %202 = tpu.matmul %201, %15, %cst_56 {dimension_numbers = #tpu.dot_dimension_numbers<[1], [0], [0], [1], [0, 0, 1, 1], [], []>} : vector<16x32xf32>, vector<32x64xf32>, vector<16x64xf32> -> vector<16x64xf32>
    %203 = vector.broadcast %11 : vector<1x64xf32> to vector<16x64xf32>
    %204 = arith.addf %202, %203 : vector<16x64xf32>
    %cst_57 = arith.constant 0.000000e+00 : f32
    %205 = vector.broadcast %cst_57 : f32 to vector<16x64xf32>
    %206 = arith.subf %205, %204 : vector<16x64xf32>
    %207 = math.exp %206 : vector<16x64xf32>
    %cst_58 = arith.constant 1.000000e+00 : f32
    %208 = vector.broadcast %cst_58 : f32 to vector<16x64xf32>
    %209 = arith.addf %208, %207 : vector<16x64xf32>
    %cst_59 = arith.constant 1.000000e+00 : f32
    %210 = vector.broadcast %cst_59 : f32 to vector<16x64xf32>
    %211 = arith.divf %210, %209 : vector<16x64xf32>
    %212 = arith.mulf %204, %211 : vector<16x64xf32>
    %cst_60 = arith.constant dense<0.000000e+00> : vector<16x32xf32>
    %213 = tpu.matmul %212, %16, %cst_60 {dimension_numbers = #tpu.dot_dimension_numbers<[1], [0], [0], [1], [0, 0, 1, 1], [], []>} : vector<16x64xf32>, vector<64x32xf32>, vector<16x32xf32> -> vector<16x32xf32>
    %214 = vector.broadcast %12 : vector<1x32xf32> to vector<16x32xf32>
    %215 = arith.addf %213, %214 : vector<16x32xf32>
    %216 = arith.addf %179, %215 : vector<16x32xf32>
    %cst_61 = arith.constant dense<0.000000e+00> : vector<16xf32>
    %217 = vector.multi_reduction <add>, %216, %cst_61 [1] : vector<16x32xf32> to vector<16xf32>
    %218 = vector.shape_cast %217 : vector<16xf32> to vector<16x1xf32>
    %cst_62 = arith.constant 3.200000e+01 : f32
    %219 = vector.broadcast %cst_62 : f32 to vector<16x1xf32>
    %220 = arith.divf %218, %219 : vector<16x1xf32>
    %221 = vector.broadcast %220 : vector<16x1xf32> to vector<16x32xf32>
    %222 = arith.subf %216, %221 : vector<16x32xf32>
    %223 = arith.mulf %222, %222 : vector<16x32xf32>
    %cst_63 = arith.constant dense<0.000000e+00> : vector<16xf32>
    %224 = vector.multi_reduction <add>, %223, %cst_63 [1] : vector<16x32xf32> to vector<16xf32>
    %225 = vector.shape_cast %224 : vector<16xf32> to vector<16x1xf32>
    %cst_64 = arith.constant 3.200000e+01 : f32
    %226 = vector.broadcast %cst_64 : f32 to vector<16x1xf32>
    %227 = arith.divf %225, %226 : vector<16x1xf32>
    %228 = vector.broadcast %220 : vector<16x1xf32> to vector<16x32xf32>
    %229 = arith.subf %216, %228 : vector<16x32xf32>
    %cst_65 = arith.constant 9.99999997E-7 : f32
    %230 = vector.broadcast %cst_65 : f32 to vector<16x1xf32>
    %231 = arith.addf %227, %230 : vector<16x1xf32>
    %232 = math.rsqrt %231 : vector<16x1xf32>
    %233 = vector.broadcast %232 : vector<16x1xf32> to vector<16x32xf32>
    %234 = arith.mulf %229, %233 : vector<16x32xf32>
    %235 = vector.broadcast %5 : vector<1x32xf32> to vector<16x32xf32>
    %236 = arith.mulf %234, %235 : vector<16x32xf32>
    %237 = vector.broadcast %6 : vector<1x32xf32> to vector<16x32xf32>
    %238 = arith.addf %236, %237 : vector<16x32xf32>
    %cst_66 = arith.constant dense<0.000000e+00> : vector<16x128xf32>
    %239 = tpu.matmul %238, %0, %cst_66 {dimension_numbers = #tpu.dot_dimension_numbers<[1], [0], [0], [1], [0, 0, 1, 1], [], []>} : vector<16x32xf32>, vector<32x128xf32>, vector<16x128xf32> -> vector<16x128xf32>
    %240 = vector.broadcast %9 : vector<1x128xf32> to vector<16x128xf32>
    %241 = arith.addf %239, %240 : vector<16x128xf32>
    %242 = arith.mulf %241, %2 : vector<16x128xf32>
    %cst_67 = arith.constant dense<0.000000e+00> : vector<16x128xf32>
    %243 = tpu.matmul %241, %1, %cst_67 {dimension_numbers = #tpu.dot_dimension_numbers<[1], [0], [0], [1], [0, 0, 1, 1], [], []>} : vector<16x128xf32>, vector<128x128xf32>, vector<16x128xf32> -> vector<16x128xf32>
    %244 = arith.mulf %243, %3 : vector<16x128xf32>
    %245 = arith.addf %242, %244 : vector<16x128xf32>
    %246 = vector.extract_strided_slice %245 {offsets = [0, 96], sizes = [16, 32], strides = [1, 1]} : vector<16x128xf32> to vector<16x32xf32>
    %cst_68 = arith.constant 0.000000e+00 : f32
    %247 = vector.broadcast %cst_68 : f32 to vector<16x32xf32>
    %248 = arith.subf %247, %246 : vector<16x32xf32>
    %249 = math.exp %248 : vector<16x32xf32>
    %cst_69 = arith.constant 1.000000e+00 : f32
    %250 = vector.broadcast %cst_69 : f32 to vector<16x32xf32>
    %251 = arith.addf %250, %249 : vector<16x32xf32>
    %cst_70 = arith.constant 1.000000e+00 : f32
    %252 = vector.broadcast %cst_70 : f32 to vector<16x32xf32>
    %253 = arith.divf %252, %251 : vector<16x32xf32>
    %254 = arith.mulf %246, %253 : vector<16x32xf32>
    %cst_71 = arith.constant 0.000000e+00 : f32
    %255 = vector.broadcast %cst_71 : f32 to vector<16x32xf32>
    %256 = vector.extract_strided_slice %245 {offsets = [0, 0], sizes = [16, 8], strides = [1, 1]} : vector<16x128xf32> to vector<16x8xf32>
    %257 = vector.extract_strided_slice %245 {offsets = [0, 32], sizes = [16, 8], strides = [1, 1]} : vector<16x128xf32> to vector<16x8xf32>
    %258 = vector.extract_strided_slice %245 {offsets = [0, 64], sizes = [16, 8], strides = [1, 1]} : vector<16x128xf32> to vector<16x8xf32>
    %cst_72 = arith.constant dense<0.000000e+00> : vector<16x16xf32>
    %259 = tpu.matmul %256, %257, %cst_72 {dimension_numbers = #tpu.dot_dimension_numbers<[1], [1], [0], [0], [0, 0, 1, 0], [], []>} : vector<16x8xf32>, vector<16x8xf32>, vector<16x16xf32> -> vector<16x16xf32>
    %260 = vector.extract_strided_slice %13 {offsets = [128, 0], sizes = [16, 16], strides = [1, 1]} : vector<192x64xf32> to vector<16x16xf32>
    %261 = arith.mulf %259, %260 : vector<16x16xf32>
    %cst_73 = arith.constant dense<0.000000e+00> : vector<16x8xf32>
    %262 = tpu.matmul %261, %258, %cst_73 {dimension_numbers = #tpu.dot_dimension_numbers<[1], [0], [0], [1], [0, 0, 1, 1], [], []>} : vector<16x16xf32>, vector<16x8xf32>, vector<16x8xf32> -> vector<16x8xf32>
    %cst_74 = arith.constant dense<0.000000e+00> : vector<16xf32>
    %263 = vector.multi_reduction <add>, %262, %cst_74 [1] : vector<16x8xf32> to vector<16xf32>
    %264 = vector.shape_cast %263 : vector<16xf32> to vector<16x1xf32>
    %cst_75 = arith.constant 8.000000e+00 : f32
    %265 = vector.broadcast %cst_75 : f32 to vector<16x1xf32>
    %266 = arith.divf %264, %265 : vector<16x1xf32>
    %267 = vector.broadcast %266 : vector<16x1xf32> to vector<16x8xf32>
    %268 = arith.subf %262, %267 : vector<16x8xf32>
    %269 = arith.mulf %268, %268 : vector<16x8xf32>
    %cst_76 = arith.constant dense<0.000000e+00> : vector<16xf32>
    %270 = vector.multi_reduction <add>, %269, %cst_76 [1] : vector<16x8xf32> to vector<16xf32>
    %271 = vector.shape_cast %270 : vector<16xf32> to vector<16x1xf32>
    %cst_77 = arith.constant 8.000000e+00 : f32
    %272 = vector.broadcast %cst_77 : f32 to vector<16x1xf32>
    %273 = arith.divf %271, %272 : vector<16x1xf32>
    %274 = vector.broadcast %266 : vector<16x1xf32> to vector<16x8xf32>
    %275 = arith.subf %262, %274 : vector<16x8xf32>
    %cst_78 = arith.constant 9.99999997E-7 : f32
    %276 = vector.broadcast %cst_78 : f32 to vector<16x1xf32>
    %277 = arith.addf %273, %276 : vector<16x1xf32>
    %278 = math.rsqrt %277 : vector<16x1xf32>
    %279 = vector.broadcast %278 : vector<16x1xf32> to vector<16x8xf32>
    %280 = arith.mulf %275, %279 : vector<16x8xf32>
    %281 = vector.extract_strided_slice %254 {offsets = [0, 0], sizes = [16, 8], strides = [1, 1]} : vector<16x32xf32> to vector<16x8xf32>
    %282 = arith.mulf %280, %281 : vector<16x8xf32>
    %283 = vector.extract_strided_slice %14 {offsets = [0, 0], sizes = [8, 32], strides = [1, 1]} : vector<32x32xf32> to vector<8x32xf32>
    %cst_79 = arith.constant dense<0.000000e+00> : vector<16x32xf32>
    %284 = tpu.matmul %282, %283, %cst_79 {dimension_numbers = #tpu.dot_dimension_numbers<[1], [0], [0], [1], [0, 0, 1, 1], [], []>} : vector<16x8xf32>, vector<8x32xf32>, vector<16x32xf32> -> vector<16x32xf32>
    %285 = arith.addf %255, %284 : vector<16x32xf32>
    %286 = vector.extract_strided_slice %245 {offsets = [0, 8], sizes = [16, 8], strides = [1, 1]} : vector<16x128xf32> to vector<16x8xf32>
    %287 = vector.extract_strided_slice %245 {offsets = [0, 40], sizes = [16, 8], strides = [1, 1]} : vector<16x128xf32> to vector<16x8xf32>
    %288 = vector.extract_strided_slice %245 {offsets = [0, 72], sizes = [16, 8], strides = [1, 1]} : vector<16x128xf32> to vector<16x8xf32>
    %cst_80 = arith.constant dense<0.000000e+00> : vector<16x16xf32>
    %289 = tpu.matmul %286, %287, %cst_80 {dimension_numbers = #tpu.dot_dimension_numbers<[1], [1], [0], [0], [0, 0, 1, 0], [], []>} : vector<16x8xf32>, vector<16x8xf32>, vector<16x16xf32> -> vector<16x16xf32>
    %290 = vector.extract_strided_slice %13 {offsets = [144, 0], sizes = [16, 16], strides = [1, 1]} : vector<192x64xf32> to vector<16x16xf32>
    %291 = arith.mulf %289, %290 : vector<16x16xf32>
    %cst_81 = arith.constant dense<0.000000e+00> : vector<16x8xf32>
    %292 = tpu.matmul %291, %288, %cst_81 {dimension_numbers = #tpu.dot_dimension_numbers<[1], [0], [0], [1], [0, 0, 1, 1], [], []>} : vector<16x16xf32>, vector<16x8xf32>, vector<16x8xf32> -> vector<16x8xf32>
    %cst_82 = arith.constant dense<0.000000e+00> : vector<16xf32>
    %293 = vector.multi_reduction <add>, %292, %cst_82 [1] : vector<16x8xf32> to vector<16xf32>
    %294 = vector.shape_cast %293 : vector<16xf32> to vector<16x1xf32>
    %cst_83 = arith.constant 8.000000e+00 : f32
    %295 = vector.broadcast %cst_83 : f32 to vector<16x1xf32>
    %296 = arith.divf %294, %295 : vector<16x1xf32>
    %297 = vector.broadcast %296 : vector<16x1xf32> to vector<16x8xf32>
    %298 = arith.subf %292, %297 : vector<16x8xf32>
    %299 = arith.mulf %298, %298 : vector<16x8xf32>
    %cst_84 = arith.constant dense<0.000000e+00> : vector<16xf32>
    %300 = vector.multi_reduction <add>, %299, %cst_84 [1] : vector<16x8xf32> to vector<16xf32>
    %301 = vector.shape_cast %300 : vector<16xf32> to vector<16x1xf32>
    %cst_85 = arith.constant 8.000000e+00 : f32
    %302 = vector.broadcast %cst_85 : f32 to vector<16x1xf32>
    %303 = arith.divf %301, %302 : vector<16x1xf32>
    %304 = vector.broadcast %296 : vector<16x1xf32> to vector<16x8xf32>
    %305 = arith.subf %292, %304 : vector<16x8xf32>
    %cst_86 = arith.constant 9.99999997E-7 : f32
    %306 = vector.broadcast %cst_86 : f32 to vector<16x1xf32>
    %307 = arith.addf %303, %306 : vector<16x1xf32>
    %308 = math.rsqrt %307 : vector<16x1xf32>
    %309 = vector.broadcast %308 : vector<16x1xf32> to vector<16x8xf32>
    %310 = arith.mulf %305, %309 : vector<16x8xf32>
    %311 = vector.extract_strided_slice %254 {offsets = [0, 8], sizes = [16, 8], strides = [1, 1]} : vector<16x32xf32> to vector<16x8xf32>
    %312 = arith.mulf %310, %311 : vector<16x8xf32>
    %313 = vector.extract_strided_slice %14 {offsets = [8, 0], sizes = [8, 32], strides = [1, 1]} : vector<32x32xf32> to vector<8x32xf32>
    %cst_87 = arith.constant dense<0.000000e+00> : vector<16x32xf32>
    %314 = tpu.matmul %312, %313, %cst_87 {dimension_numbers = #tpu.dot_dimension_numbers<[1], [0], [0], [1], [0, 0, 1, 1], [], []>} : vector<16x8xf32>, vector<8x32xf32>, vector<16x32xf32> -> vector<16x32xf32>
    %315 = arith.addf %285, %314 : vector<16x32xf32>
    %316 = vector.extract_strided_slice %245 {offsets = [0, 16], sizes = [16, 8], strides = [1, 1]} : vector<16x128xf32> to vector<16x8xf32>
    %317 = vector.extract_strided_slice %245 {offsets = [0, 48], sizes = [16, 8], strides = [1, 1]} : vector<16x128xf32> to vector<16x8xf32>
    %318 = vector.extract_strided_slice %245 {offsets = [0, 80], sizes = [16, 8], strides = [1, 1]} : vector<16x128xf32> to vector<16x8xf32>
    %cst_88 = arith.constant dense<0.000000e+00> : vector<16x16xf32>
    %319 = tpu.matmul %316, %317, %cst_88 {dimension_numbers = #tpu.dot_dimension_numbers<[1], [1], [0], [0], [0, 0, 1, 0], [], []>} : vector<16x8xf32>, vector<16x8xf32>, vector<16x16xf32> -> vector<16x16xf32>
    %320 = vector.extract_strided_slice %13 {offsets = [160, 0], sizes = [16, 16], strides = [1, 1]} : vector<192x64xf32> to vector<16x16xf32>
    %321 = arith.mulf %319, %320 : vector<16x16xf32>
    %cst_89 = arith.constant dense<0.000000e+00> : vector<16x8xf32>
    %322 = tpu.matmul %321, %318, %cst_89 {dimension_numbers = #tpu.dot_dimension_numbers<[1], [0], [0], [1], [0, 0, 1, 1], [], []>} : vector<16x16xf32>, vector<16x8xf32>, vector<16x8xf32> -> vector<16x8xf32>
    %cst_90 = arith.constant dense<0.000000e+00> : vector<16xf32>
    %323 = vector.multi_reduction <add>, %322, %cst_90 [1] : vector<16x8xf32> to vector<16xf32>
    %324 = vector.shape_cast %323 : vector<16xf32> to vector<16x1xf32>
    %cst_91 = arith.constant 8.000000e+00 : f32
    %325 = vector.broadcast %cst_91 : f32 to vector<16x1xf32>
    %326 = arith.divf %324, %325 : vector<16x1xf32>
    %327 = vector.broadcast %326 : vector<16x1xf32> to vector<16x8xf32>
    %328 = arith.subf %322, %327 : vector<16x8xf32>
    %329 = arith.mulf %328, %328 : vector<16x8xf32>
    %cst_92 = arith.constant dense<0.000000e+00> : vector<16xf32>
    %330 = vector.multi_reduction <add>, %329, %cst_92 [1] : vector<16x8xf32> to vector<16xf32>
    %331 = vector.shape_cast %330 : vector<16xf32> to vector<16x1xf32>
    %cst_93 = arith.constant 8.000000e+00 : f32
    %332 = vector.broadcast %cst_93 : f32 to vector<16x1xf32>
    %333 = arith.divf %331, %332 : vector<16x1xf32>
    %334 = vector.broadcast %326 : vector<16x1xf32> to vector<16x8xf32>
    %335 = arith.subf %322, %334 : vector<16x8xf32>
    %cst_94 = arith.constant 9.99999997E-7 : f32
    %336 = vector.broadcast %cst_94 : f32 to vector<16x1xf32>
    %337 = arith.addf %333, %336 : vector<16x1xf32>
    %338 = math.rsqrt %337 : vector<16x1xf32>
    %339 = vector.broadcast %338 : vector<16x1xf32> to vector<16x8xf32>
    %340 = arith.mulf %335, %339 : vector<16x8xf32>
    %341 = vector.extract_strided_slice %254 {offsets = [0, 16], sizes = [16, 8], strides = [1, 1]} : vector<16x32xf32> to vector<16x8xf32>
    %342 = arith.mulf %340, %341 : vector<16x8xf32>
    %343 = vector.extract_strided_slice %14 {offsets = [16, 0], sizes = [8, 32], strides = [1, 1]} : vector<32x32xf32> to vector<8x32xf32>
    %cst_95 = arith.constant dense<0.000000e+00> : vector<16x32xf32>
    %344 = tpu.matmul %342, %343, %cst_95 {dimension_numbers = #tpu.dot_dimension_numbers<[1], [0], [0], [1], [0, 0, 1, 1], [], []>} : vector<16x8xf32>, vector<8x32xf32>, vector<16x32xf32> -> vector<16x32xf32>
    %345 = arith.addf %315, %344 : vector<16x32xf32>
    %346 = vector.extract_strided_slice %245 {offsets = [0, 24], sizes = [16, 8], strides = [1, 1]} : vector<16x128xf32> to vector<16x8xf32>
    %347 = vector.extract_strided_slice %245 {offsets = [0, 56], sizes = [16, 8], strides = [1, 1]} : vector<16x128xf32> to vector<16x8xf32>
    %348 = vector.extract_strided_slice %245 {offsets = [0, 88], sizes = [16, 8], strides = [1, 1]} : vector<16x128xf32> to vector<16x8xf32>
    %cst_96 = arith.constant dense<0.000000e+00> : vector<16x16xf32>
    %349 = tpu.matmul %346, %347, %cst_96 {dimension_numbers = #tpu.dot_dimension_numbers<[1], [1], [0], [0], [0, 0, 1, 0], [], []>} : vector<16x8xf32>, vector<16x8xf32>, vector<16x16xf32> -> vector<16x16xf32>
    %350 = vector.extract_strided_slice %13 {offsets = [176, 0], sizes = [16, 16], strides = [1, 1]} : vector<192x64xf32> to vector<16x16xf32>
    %351 = arith.mulf %349, %350 : vector<16x16xf32>
    %cst_97 = arith.constant dense<0.000000e+00> : vector<16x8xf32>
    %352 = tpu.matmul %351, %348, %cst_97 {dimension_numbers = #tpu.dot_dimension_numbers<[1], [0], [0], [1], [0, 0, 1, 1], [], []>} : vector<16x16xf32>, vector<16x8xf32>, vector<16x8xf32> -> vector<16x8xf32>
    %cst_98 = arith.constant dense<0.000000e+00> : vector<16xf32>
    %353 = vector.multi_reduction <add>, %352, %cst_98 [1] : vector<16x8xf32> to vector<16xf32>
    %354 = vector.shape_cast %353 : vector<16xf32> to vector<16x1xf32>
    %cst_99 = arith.constant 8.000000e+00 : f32
    %355 = vector.broadcast %cst_99 : f32 to vector<16x1xf32>
    %356 = arith.divf %354, %355 : vector<16x1xf32>
    %357 = vector.broadcast %356 : vector<16x1xf32> to vector<16x8xf32>
    %358 = arith.subf %352, %357 : vector<16x8xf32>
    %359 = arith.mulf %358, %358 : vector<16x8xf32>
    %cst_100 = arith.constant dense<0.000000e+00> : vector<16xf32>
    %360 = vector.multi_reduction <add>, %359, %cst_100 [1] : vector<16x8xf32> to vector<16xf32>
    %361 = vector.shape_cast %360 : vector<16xf32> to vector<16x1xf32>
    %cst_101 = arith.constant 8.000000e+00 : f32
    %362 = vector.broadcast %cst_101 : f32 to vector<16x1xf32>
    %363 = arith.divf %361, %362 : vector<16x1xf32>
    %364 = vector.broadcast %356 : vector<16x1xf32> to vector<16x8xf32>
    %365 = arith.subf %352, %364 : vector<16x8xf32>
    %cst_102 = arith.constant 9.99999997E-7 : f32
    %366 = vector.broadcast %cst_102 : f32 to vector<16x1xf32>
    %367 = arith.addf %363, %366 : vector<16x1xf32>
    %368 = math.rsqrt %367 : vector<16x1xf32>
    %369 = vector.broadcast %368 : vector<16x1xf32> to vector<16x8xf32>
    %370 = arith.mulf %365, %369 : vector<16x8xf32>
    %371 = vector.extract_strided_slice %254 {offsets = [0, 24], sizes = [16, 8], strides = [1, 1]} : vector<16x32xf32> to vector<16x8xf32>
    %372 = arith.mulf %370, %371 : vector<16x8xf32>
    %373 = vector.extract_strided_slice %14 {offsets = [24, 0], sizes = [8, 32], strides = [1, 1]} : vector<32x32xf32> to vector<8x32xf32>
    %cst_103 = arith.constant dense<0.000000e+00> : vector<16x32xf32>
    %374 = tpu.matmul %372, %373, %cst_103 {dimension_numbers = #tpu.dot_dimension_numbers<[1], [0], [0], [1], [0, 0, 1, 1], [], []>} : vector<16x8xf32>, vector<8x32xf32>, vector<16x32xf32> -> vector<16x32xf32>
    %375 = arith.addf %345, %374 : vector<16x32xf32>
    %376 = arith.addf %216, %375 : vector<16x32xf32>
    %377 = vector.broadcast %10 : vector<1x32xf32> to vector<16x32xf32>
    %378 = arith.addf %376, %377 : vector<16x32xf32>
    %cst_104 = arith.constant dense<0.000000e+00> : vector<16xf32>
    %379 = vector.multi_reduction <add>, %378, %cst_104 [1] : vector<16x32xf32> to vector<16xf32>
    %380 = vector.shape_cast %379 : vector<16xf32> to vector<16x1xf32>
    %cst_105 = arith.constant 3.200000e+01 : f32
    %381 = vector.broadcast %cst_105 : f32 to vector<16x1xf32>
    %382 = arith.divf %380, %381 : vector<16x1xf32>
    %383 = vector.broadcast %382 : vector<16x1xf32> to vector<16x32xf32>
    %384 = arith.subf %378, %383 : vector<16x32xf32>
    %385 = arith.mulf %384, %384 : vector<16x32xf32>
    %cst_106 = arith.constant dense<0.000000e+00> : vector<16xf32>
    %386 = vector.multi_reduction <add>, %385, %cst_106 [1] : vector<16x32xf32> to vector<16xf32>
    %387 = vector.shape_cast %386 : vector<16xf32> to vector<16x1xf32>
    %cst_107 = arith.constant 3.200000e+01 : f32
    %388 = vector.broadcast %cst_107 : f32 to vector<16x1xf32>
    %389 = arith.divf %387, %388 : vector<16x1xf32>
    %390 = vector.broadcast %382 : vector<16x1xf32> to vector<16x32xf32>
    %391 = arith.subf %378, %390 : vector<16x32xf32>
    %cst_108 = arith.constant 9.99999997E-7 : f32
    %392 = vector.broadcast %cst_108 : f32 to vector<16x1xf32>
    %393 = arith.addf %389, %392 : vector<16x1xf32>
    %394 = math.rsqrt %393 : vector<16x1xf32>
    %395 = vector.broadcast %394 : vector<16x1xf32> to vector<16x32xf32>
    %396 = arith.mulf %391, %395 : vector<16x32xf32>
    %397 = vector.broadcast %7 : vector<1x32xf32> to vector<16x32xf32>
    %398 = arith.mulf %396, %397 : vector<16x32xf32>
    %399 = vector.broadcast %8 : vector<1x32xf32> to vector<16x32xf32>
    %400 = arith.addf %398, %399 : vector<16x32xf32>
    %cst_109 = arith.constant dense<0.000000e+00> : vector<16x64xf32>
    %401 = tpu.matmul %400, %15, %cst_109 {dimension_numbers = #tpu.dot_dimension_numbers<[1], [0], [0], [1], [0, 0, 1, 1], [], []>} : vector<16x32xf32>, vector<32x64xf32>, vector<16x64xf32> -> vector<16x64xf32>
    %402 = vector.broadcast %11 : vector<1x64xf32> to vector<16x64xf32>
    %403 = arith.addf %401, %402 : vector<16x64xf32>
    %cst_110 = arith.constant 0.000000e+00 : f32
    %404 = vector.broadcast %cst_110 : f32 to vector<16x64xf32>
    %405 = arith.subf %404, %403 : vector<16x64xf32>
    %406 = math.exp %405 : vector<16x64xf32>
    %cst_111 = arith.constant 1.000000e+00 : f32
    %407 = vector.broadcast %cst_111 : f32 to vector<16x64xf32>
    %408 = arith.addf %407, %406 : vector<16x64xf32>
    %cst_112 = arith.constant 1.000000e+00 : f32
    %409 = vector.broadcast %cst_112 : f32 to vector<16x64xf32>
    %410 = arith.divf %409, %408 : vector<16x64xf32>
    %411 = arith.mulf %403, %410 : vector<16x64xf32>
    %cst_113 = arith.constant dense<0.000000e+00> : vector<16x32xf32>
    %412 = tpu.matmul %411, %16, %cst_113 {dimension_numbers = #tpu.dot_dimension_numbers<[1], [0], [0], [1], [0, 0, 1, 1], [], []>} : vector<16x64xf32>, vector<64x32xf32>, vector<16x32xf32> -> vector<16x32xf32>
    %413 = vector.broadcast %12 : vector<1x32xf32> to vector<16x32xf32>
    %414 = arith.addf %412, %413 : vector<16x32xf32>
    %415 = arith.addf %378, %414 : vector<16x32xf32>
    %c0_114 = arith.constant 0 : index
    %c0_115 = arith.constant 0 : index
    %416 = vector.load %arg3[%c0_114, %c0_115] : memref<16x32xf32, #tpu.memory_space<vmem>>, vector<16x32xf32>
    tpu.vector_store %arg3[%c0_114, %c0_115], %415 {strides = array<i32>} : memref<16x32xf32, #tpu.memory_space<vmem>>, vector<16x32xf32>,
    return
  }
}

</mosaic_0001>

<bundles_post_ra>
// kernel: tpu_custom_call.1
= control target key start
LH: loop header
LB: loop body
LE: loop exit
PB: predicated region body
PF: predicated region fallthrough
CT: control target
= control target key end

     0   :  { %vm66_vm0 = vcmask 261120   ;;  %s5088_s0 = inlined_call_operand.vmem [shape: f32[16,32], index: 0, kind: input, shape index: {}]   ;;  %s5089_s1 = inlined_call_operand.vmem [shape: f32[200,128], index: 1, kind: input, shape index: {}]   ;;  %s5090_s2 = inlined_call_operand.vmem [shape: f32[192,64], index: 2, kind: input, shape index: {}]   ;;  %s5091_s3 = inlined_call_operand.hbm [shape: f32[16,32], index: 3, kind: output, shape index: {}]  }
   0x1   :  { %v4333_v0 = vld [vmem:[%s5088_s0] sm:$0xff]  ;;  %v4338_v1 = vld [vmem:[%s5088_s0 + $0x8] sm:$0xff] }
   0x2   :  { %8 = vsyncpa [#allocation3], 0  ;;  %v67_v2 = vsel %vm66_vm0, %v4333_v0, 0.0  ;;  %v70_v3 = vsel %vm66_vm0, %v4338_v1, 0.0  ;;  %v94_v4 = vlaneseq  ;;  %v4349_v6 = vld [vmem:[%s5089_s1 + $0xc0] sm:$0xff]  ;;  %s4293_s0 = smov 96  }
   0x3   :  { %68 = vadd.xlane.f32.xlu0 %v67_v2  ;;  %v15_v19 = vld [vmem:[%s5089_s1] sm:$0xff]  ;;  %v16_v20 = vld [vmem:[%s5089_s1 + $0x8] sm:$0xff]  ;;  %v17_v22 = vld [vmem:[%s5089_s1 + $0x10] sm:$0xff]  ;;  %vm292_vm1 = vcmask 64512   ;;  %s4294_s12 = smov 120   ;;  %s4296_s13 = smov 64  }
   0x4   :  { %v4344_v5 = vshrl.u32 %v94_v4, 7  ;;  %v4367_v21 = vpack.c.bf16 %v16_v20, %v15_v19  ;;  %v18_v23 = vld [vmem:[%s5089_s1 + $0x18] sm:$0xff]  ;;  %v19_v25 = vld [vmem:[%s5089_s1 + $0x20] sm:$0xff]  ;;  %v20_v26 = vld [vmem:[%s5089_s1 + $0x28] sm:$0xff]  ;;  %s4297_s14 = smov 112   ;;  %s4298_s15 = smov 88  }
   0x5   :  { %v4377_v24 = vpack.c.bf16 %v18_v23, %v17_v22  ;;  %v4387_v27 = vpack.c.bf16 %v20_v26, %v19_v25  ;;  %v21_v41 = vld [vmem:[%s5089_s1 + $0x30] sm:$0xff]  ;;  %v22_v42 = vld [vmem:[%s5089_s1 + $0x38] sm:$0xff]  ;;  %v23_v46 = vld [vmem:[%s5089_s1 + $0x40] sm:$0xff]  ;;  %s4299_s16 = smov 80   ;;  %vm384_vm3 = vcmask 130048   ;;  %s4300_s25 = smov 24  }
   0x6   :  { %v96_v7 = vsub.s32 0, %v4344_v5  ;;  %3872 = vmatprep.subr.bf16.mxu1 %v4367_v21  ;;  %v4403_v45 = vpack.c.bf16 %v22_v42, %v21_v41  ;;  %v24_v47 = vld [vmem:[%s5089_s1 + $0x48] sm:$0xff]  ;;  %v25_v49 = vld [vmem:[%s5089_s1 + $0x50] sm:$0xff]  ;;  %v26_v50 = vld [vmem:[%s5089_s1 + $0x58] sm:$0xff]  ;;  %v108_v2 = vsub.s32 1, %v4344_v5  ;;  %s4301_s26 = smov 32  }
   0x7   :  { %71 = vadd.xlane.f32.xlu0 %v70_v3  ;;  %3874 = vmatpush3.bf16.msra.mxu1 %v4367_v21  ;;  %v4414_v48 = vpack.c.bf16 %v24_v47, %v23_v46  ;;  %v4424_v51 = vpack.c.bf16 %v26_v50, %v25_v49  ;;  %v27_v52 = vld [vmem:[%s5089_s1 + $0x60] sm:$0xff]  ;;  %v28_v53 = vld [vmem:[%s5089_s1 + $0x68] sm:$0xff]  ;;  %v29_v55 = vld [vmem:[%s5089_s1 + $0x70] sm:$0xff]  ;;  %s4302_s27 = smov 48   ;;  %s4303_s28 = smov 104   ;;  %vm1619_vm4 = vcmask 523264  }
   0x8   :  { %v4353_v8 = vrot.slane %v4349_v6, %v96_v7  ;;  %3876 = vmatprep.subr.bf16.mxu1 %v4377_v24  ;;  %v4434_v54 = vpack.c.bf16 %v28_v53, %v27_v52  ;;  %v30_v56 = vld [vmem:[%s5089_s1 + $0x78] sm:$0xff]  ;;  %v31_v58 = vld [vmem:[%s5089_s1 + $0x80] sm:$0xff]  ;;  %v32_v59 = vld [vmem:[%s5089_s1 + $0x88] sm:$0xff]  ;;  %v4471_v3 = vrot.slane %v4349_v6, %v108_v2  ;;  %s4304_s29 = smov 72   ;;  %s4305_s11 = smov 16  }
   0x9   :  { %v4444_v57 = vpack.c.bf16 %v30_v56, %v29_v55  ;;  %v4454_v60 = vpack.c.bf16 %v32_v59, %v31_v58  ;;  %v33_v61 = vld [vmem:[%s5089_s1 + $0x90] sm:$0xff]  ;;  %v34_v62 = vld [vmem:[%s5089_s1 + $0x98] sm:$0xff]  ;;  %vm4529_vm2 = vmpackc.low %vm292_vm1, %vm292_vm1  ;;  %s4306_s17 = smov 40   ;;  %s4307_s24 = smov 8  }
   0xa   :  { %v4465_v63 = vpack.c.bf16 %v34_v62, %v33_v61  ;;  %v4550_v53 = vld [vmem:[%s5090_s2 + $0x80] sm:$0xff]  ;;  %v4555_v55 = vld [vmem:[%s5090_s2 + $0x88] sm:$0xff] }
   0xb   :  { %3878 = vmatpush3.bf16.msra.mxu1 %v4377_v24 }
   0xc   :  { %3880 = vmatprep.subr.bf16.mxu1 %v4387_v27 }
  0x1d   :  { %101 = vrot.lane.b32.xlu0 %v4353_v8, %s4293_s0 }
  0x90   :  { %v69_v9 = vpop.xlane.xlu0 %68 }
  0x91   :  { %v74_v10 = vmul.f32 0.03125, %v69_v9 }
  0x93   :  { %v76_v11 = vsub.f32 %v4333_v0, %v74_v10 }
  0x94   :  { %v72_v12 = vpop.xlane.xlu0 %71 }
  0x95   :  { %v75_v13 = vmul.f32 0.03125, %v72_v12  ;;  %v78_v14 = vmul.f32 %v76_v11, %v76_v11  ;;  %v4483_v12 = vld [vmem:[%s5089_s1 + $0xb8] sm:$0xff] }
  0x97   :  { %v77_v15 = vsub.f32 %v4338_v1, %v75_v13  ;;  %v80_v16 = vsel %vm66_vm0, %v78_v14, 0.0  ;;  %v4488_v13 = vld [vmem:[%s5089_s1 + $0xa0] sm:$0xff]  ;;  %v4493_v14 = vld [vmem:[%s5089_s1 + $0xb0] sm:$0xff] }
  0x98   :  { %81 = vadd.xlane.f32.xlu1 %v80_v16  ;;  %v4390_v36 = vpop.permute.xlu0 %101 }
  0x99   :  { %v79_v17 = vmul.f32 %v77_v15, %v77_v15 }
  0x9b   :  { %v83_v18 = vsel %vm66_vm0, %v79_v17, 0.0 }
  0x9c   :  { %84 = vadd.xlane.f32.xlu1 %v83_v18 }
 0x125   :  { %v82_v28 = vpop.xlane.xlu1 %81 }
 0x126   :  { %v86_v29 = vmul.f32 0.03125, %v82_v28 }
 0x128   :  { %v88_v30 = vadd.f32 1e-06, %v86_v29 }
 0x129   :  { %v85_v31 = vpop.xlane.xlu1 %84 }
 0x12a   :  { %4188 = vrsqrt.f32 %v88_v30  ;;  %v87_v32 = vmul.f32 0.03125, %v85_v31 }
 0x12c   :  { %v89_v33 = vadd.f32 1e-06, %v87_v32 }
 0x12e   :  { %4190 = vrsqrt.f32 %v89_v33 }
 0x134   :  { %v4189_v34 = vpop.eup %4188 }
 0x135   :  { %v92_v35 = vmul.f32 %v4189_v34, %v76_v11  ;;  %v4478_v11 = vld [vmem:[%s5089_s1 + $0xa8] sm:$0xff]  ;;  %s4295_s1 = smov 56  }
 0x137   :  { %v98_v37 = vmul.f32 %v4353_v8, %v92_v35 }
 0x138   :  { %v4191_v38 = vpop.eup %4190 }
 0x139   :  { %v93_v39 = vmul.f32 %v4191_v38, %v77_v15  ;;  %v104_v40 = vadd.f32 %v4390_v36, %v98_v37 }
 0x13b   :  { %v99_v43 = vmul.f32 %v4353_v8, %v93_v39  ;;  %3575 = vmatprep.mubr.msk.f32.mxu1 %vm66_vm0, %v104_v40 }
 0x13d   :  { %v105_v44 = vadd.f32 %v4390_v36, %v99_v43 }
 0x13f   :  { %3576 = vmatmul.mubr.msk.f32.vlgmr.msra.gmra.mrb[0].mxu1 %vm66_vm0, %v105_v44 }
 0x140   :  { %3882 = vmatpush3.bf16.msra.mxu1 %v4387_v27 }
 0x141   :  { %3884 = vmatprep.subr.bf16.mxu1 %v4403_v45 }
 0x144   :  { %3886 = vmatpush3.bf16.msra.mxu1 %v4403_v45 }
 0x145   :  { %3888 = vmatprep.subr.bf16.mxu1 %v4414_v48 }
 0x148   :  { %3890 = vmatpush3.bf16.msra.mxu1 %v4414_v48 }
 0x149   :  { %3892 = vmatprep.subr.bf16.mxu1 %v4424_v51 }
 0x14c   :  { %3894 = vmatpush3.bf16.msra.mxu1 %v4424_v51 }
 0x14d   :  { %3896 = vmatprep.subr.bf16.mxu1 %v4434_v54 }
 0x150   :  { %3898 = vmatpush3.bf16.msra.mxu1 %v4434_v54 }
 0x151   :  { %3900 = vmatprep.subr.bf16.mxu1 %v4444_v57 }
 0x154   :  { %3902 = vmatpush3.bf16.msra.mxu1 %v4444_v57 }
 0x155   :  { %3904 = vmatprep.subr.bf16.mxu1 %v4454_v60 }
 0x158   :  { %3906 = vmatpush3.bf16.msra.mxu1 %v4454_v60 }
 0x159   :  { %3908 = vmatprep.subr.bf16.mxu1 %v4465_v63 }
 0x15c   :  { %3910 = vmatpush3.bf16.msra.mxu1 %v4465_v63 }
 0x212   :  { %v3577_v4 = vpop.f32.mrb[0].mxu1 }
 0x213   :  { %v182_v7 = vpop.f32.mrb[1].mxu1  ;;  %v188_v10 = vadd.f32 %v3577_v4, %v4471_v3 }
 0x214   :  { %v183_v9 = vadd.f32 %v182_v7, %v4471_v3 }
 0x215   :  { %v192_v16 = vmul.f32 %v188_v10, %v4478_v11 }
 0x216   :  { %3610 = vmatprep.mubr.f32.mxu1 %v183_v9  ;;  %v191_v19 = vmul.f32 %v183_v9, %v4488_v13 }
 0x217   :  { %3611 = vmatmul.mubr.f32.vlgmr.msra.gmra.mrb[2].mxu1 %v188_v10 }
 0x2ea   :  { %v3612_v15 = vpop.f32.mrb[2].mxu1 }
 0x2eb   :  { %v269_v17 = vmul.f32 %v3612_v15, %v4483_v12  ;;  %v259_v18 = vpop.f32.mrb[3].mxu1 }
 0x2ec   :  { %v268_v20 = vmul.f32 %v259_v18, %v4493_v14 }
 0x2ed   :  { %v4499_v22 = vadd.f32 %v269_v17, %v192_v16  ;;  %v4572_v16 = vld [vmem:[%s5090_s2 + $0x90] sm:$0xff]  ;;  %v4577_v17 = vld [vmem:[%s5090_s2 + $0x98] sm:$0xff] }
 0x2ee   :  { %v4501_v23 = vadd.f32 %v268_v20, %v191_v19 }
 0x2f0   :  { %503 = vrot.lane.b32.xlu0 %v4501_v23, %s4294_s12  ;;  %3617 = vmatprep.mubr.msk.f32.mxu0 %vm292_vm1, %v4501_v23  ;;  %v4509_v25 = vpack.i.bf16 %v4499_v22, %v4501_v23 }
 0x2f2   :  { %4109 = vrot.lane.b32.xlu1 %v4509_v25, %s4293_s0 }
 0x2f4   :  { %4124 = vrot.lane.b32.xlu0 %v4509_v25, %s4295_s1 }
 0x2f6   :  { %4114 = vrot.lane.b32.xlu1 %v4509_v25, %s4296_s13 }
 0x2f8   :  { %879 = vrot.lane.b32.xlu0 %v4501_v23, %s4297_s14 }
 0x2fa   :  { %4119 = vrot.lane.b32.xlu1 %v4509_v25, %s4298_s15 }
 0x2fe   :  { %505 = vrot.lane.b32.xlu1 %v4499_v22, %s4294_s12 }
 0x302   :  { %4129 = vrot.lane.b32.xlu1 %v4509_v25, %s4299_s16 }
 0x306   :  { %881 = vrot.lane.b32.xlu1 %v4499_v22, %s4297_s14 }
 0x362   :  { %v504_v26 = vpop.permute.xlu0 %503 }
 0x364   :  { %v4110_v28 = vpop.permute.xlu1 %4109 }
 0x365   :  { %v4112_v29 = vunpack.i.h.bf16 %v4110_v28  ;;  %v4111_v30 = vunpack.i.l.bf16 %v4110_v28 }
 0x366   :  { %v4125_v31 = vpop.permute.xlu0 %4124 }
 0x367   :  { %v3911_v33 = vpack.c.bf16 %v4112_v29, %v4111_v30  ;;  %v4127_v58 = vunpack.i.h.bf16 %v4125_v31  ;;  %v4126_v59 = vunpack.i.l.bf16 %v4125_v31 }
 0x368   :  { %v4115_v34 = vpop.permute.xlu1 %4114 }
 0x369   :  { %v4117_v35 = vunpack.i.h.bf16 %v4115_v34  ;;  %v4116_v37 = vunpack.i.l.bf16 %v4115_v34  ;;  %3913 = vmatprep.subr.msk.bf16.mxu0 %vm4529_vm2, %v3911_v33  ;;  %v3927_v4 = vpack.c.bf16 %v4127_v58, %v4126_v59 }
 0x36a   :  { %v880_v38 = vpop.permute.xlu0 %879  ;;  %3916 = vmatpush3.bf16.xpose.msk.msra.mxu0 %vm4529_vm2, %v3911_v33 }
 0x36b   :  { %v3917_v39 = vpack.c.bf16 %v4117_v35, %v4116_v37  ;;  %3655 = vmatprep.mubr.msk.f32.mxu1 %vm292_vm1, %v880_v38  ;;  %v273_v35 = vsub.f32 0.0, %v4499_v22  ;;  %v272_v37 = vsub.f32 0.0, %v4501_v23 }
 0x36c   :  { %v4120_v40 = vpop.permute.xlu1 %4119 }
 0x36d   :  { %v4122_v41 = vunpack.i.h.bf16 %v4120_v40  ;;  %v4121_v42 = vunpack.i.l.bf16 %v4120_v40  ;;  %3918 = vmatprep.subr.bf16.mxu0 %v3917_v39  ;;  %v274_v40 = vmul.f32 1.442695, %v272_v37 }
 0x36f   :  { %v3921_v44 = vpack.c.bf16 %v4122_v41, %v4121_v42 }
 0x370   :  { %v506_v43 = vpop.permute.xlu1 %505 }
 0x371   :  { %3618 = vmatmul.mubr.msk.f32.vlgmr.msra.gmra.mrb[0].mxu0 %vm292_vm1, %v4499_v22 }
 0x372   :  { %3920 = vmatpush3.bf16.msra.mxu0 %v3917_v39  ;;  %v276_v39 = vmul.f32 1.442695, %v273_v35  ;;  %v4639_v35 = vld [vmem:[%s5090_s2] sm:$0xff] }
 0x373   :  { %3923 = vmatprep.subr.msk.bf16.mxu0 %vm4529_vm2, %v3921_v44 }
 0x374   :  { %v4130_v46 = vpop.permute.xlu1 %4129  ;;  %4192 = vpow2.f32 %v276_v39 }
 0x375   :  { %v4132_v47 = vunpack.i.h.bf16 %v4130_v46  ;;  %v4131_v49 = vunpack.i.l.bf16 %v4130_v46  ;;  %4194 = vpow2.f32 %v274_v40 }
 0x377   :  { %v3931_v50 = vpack.c.bf16 %v4132_v47, %v4131_v49 }
 0x378   :  { %v882_v52 = vpop.permute.xlu1 %881 }
 0x379   :  { %3933 = vmatprep.subr.msk.bf16.mxu1 %vm4529_vm2, %v3931_v50 }
 0x37a   :  { %3936 = vmatpush3.bf16.xpose.msk.msra.mxu1 %vm4529_vm2, %v3931_v50 }
 0x381   :  { %3656 = vmatmul.mubr.msk.f32.vlgmr.msra.gmra.mrb[4].mxu1 %vm292_vm1, %v882_v52 }
 0x444   :  { %v3619_v56 = vpop.f32.mrb[0].mxu0 }
 0x445   :  { %v367_v61 = vpop.f32.mrb[1].mxu0  ;;  %v377_v2 = vmul.f32 %v3619_v56, %v4555_v55 }
 0x446   :  { %v376_v62 = vmul.f32 %v367_v61, %v4550_v53 }
 0x448   :  { %3624 = vmatprep.mubr.msk.f32.mxu0 %vm384_vm3, %v376_v62 }
 0x449   :  { %3625 = vmatmul.mubr.msk.f32.vlgmr.msra.gmra.mrb[2].mxu0 %vm384_vm3, %v377_v2 }
 0x44a   :  { %3926 = vmatpush3.bf16.xpose.msk.msra.mxu0 %vm4529_vm2, %v3921_v44  ;;  %3631 = vmatprep.mubr.msk.f32.mxu0 %vm292_vm1, %v504_v26 }
 0x44b   :  { %3928 = vmatprep.subr.bf16.mxu0 %v3927_v4 }
 0x451   :  { %3632 = vmatmul.mubr.msk.f32.vlgmr.msra.gmra.mrb[4].mxu0 %vm292_vm1, %v506_v43 }
 0x452   :  { %3930 = vmatpush3.bf16.msra.mxu0 %v3927_v4  ;;  %v4193_v4 = vpop.eup %4192 }
 0x454   :  { %v4565_v7 = vpop.f32.mrb[4].mxu1 }
 0x455   :  { %v4567_v9 = vpop.f32.mrb[5].mxu1 }
 0x51c   :  { %v3626_v10 = vpop.f32.mrb[2].mxu0 }
 0x51d   :  { %v457_v15 = vpop.f32.mrb[3].mxu0  ;;  %v469_v34 = vsel %vm292_vm1, %v3626_v10, 0.0 }
 0x51e   :  { %v466_v33 = vsel %vm292_vm1, %v457_v15, 0.0 }
 0x524   :  { %v3633_v18 = vpop.f32.mrb[4].mxu0 }
 0x525   :  { %v585_v19 = vpop.f32.mrb[5].mxu0  ;;  %v595_v26 = vmul.f32 %v3633_v18, %v4577_v17 }
 0x526   :  { %v594_v20 = vmul.f32 %v585_v19, %v4572_v16 }
 0x528   :  { %3638 = vmatprep.mubr.msk.f32.mxu0 %vm384_vm3, %v594_v20  ;;  %v4195_v20 = vpop.eup %4194 }
 0x529   :  { %3639 = vmatmul.mubr.msk.f32.vlgmr.msra.gmra.mrb[6].mxu0 %vm384_vm3, %v595_v26 }
 0x5fc   :  { %v3640_v28 = vpop.f32.mrb[6].mxu0 }
 0x5fd   :  { %v674_v29 = vpop.f32.mrb[7].mxu0  ;;  %v686_v30 = vsel %vm292_vm1, %v3640_v28, 0.0 }
 0x5fe   :  { %687 = vadd.xlane.f32.xlu1 %v686_v30  ;;  %v683_v31 = vsel %vm292_vm1, %v674_v29, 0.0 }
 0x5ff   :  { %684 = vadd.xlane.f32.xlu0 %v683_v31 }
 0x603   :  { %467 = vadd.xlane.f32.xlu0 %v466_v33 }
 0x607   :  { %470 = vadd.xlane.f32.xlu0 %v469_v34  ;;  %v4632_v34 = vld [vmem:[%s5090_s2 + $0x8] sm:$0xff] }
 0x608   :  { %3641 = vmatprep.subr.mxu0 %v4632_v34 }
 0x609   :  { %3642 = vmatpush3.msra.mxu0 %v4632_v34 }
 0x60a   :  { %3646 = vmatprep.subr.mxu0 %v4639_v35 }
 0x68b   :  { %v688_v42 = vpop.xlane.xlu1 %687 }
 0x68c   :  { %v685_v38 = vpop.xlane.xlu0 %684  ;;  %v690_v46 = vmul.f32 0.125, %v688_v42 }
 0x68d   :  { %v689_v41 = vmul.f32 0.125, %v685_v38 }
 0x68e   :  { %v4595_v58 = vsub.f32 %v3640_v28, %v690_v46  ;;  %v278_v28 = vadd.f32 1.0, %v4195_v20 }
 0x68f   :  { %v4589_v47 = vsub.f32 %v674_v29, %v689_v41 }
 0x690   :  { %v468_v43 = vpop.xlane.xlu0 %467  ;;  %v694_v19 = vmul.f32 %v4595_v58, %v4595_v58 }
 0x691   :  { %v473_v44 = vmul.f32 0.125, %v468_v43  ;;  %v693_v62 = vmul.f32 %v4589_v47, %v4589_v47 }
 0x692   :  { %v698_v26 = vsel %vm292_vm1, %v694_v19, 0.0 }
 0x693   :  { %v4591_v49 = vsub.f32 %v457_v15, %v473_v44  ;;  %v695_v15 = vsel %vm292_vm1, %v693_v62, 0.0 }
 0x694   :  { %v471_v50 = vpop.xlane.xlu0 %470 }
 0x695   :  { %v474_v52 = vmul.f32 0.125, %v471_v50  ;;  %v477_v56 = vmul.f32 %v4591_v49, %v4591_v49 }
 0x697   :  { %v4597_v59 = vsub.f32 %v3626_v10, %v474_v52  ;;  %v479_v61 = vsel %vm292_vm1, %v477_v56, 0.0  ;;  %v279_v10 = vadd.f32 1.0, %v4193_v4 }
 0x698   :  { %480 = vadd.xlane.f32.xlu0 %v479_v61 }
 0x699   :  { %v478_v2 = vmul.f32 %v4597_v59, %v4597_v59  ;;  %4196 = vrcp.f32 %v279_v10 }
 0x69a   :  { %4198 = vrcp.f32 %v278_v28 }
 0x69b   :  { %v482_v18 = vsel %vm292_vm1, %v478_v2, 0.0 }
 0x69c   :  { %696 = vadd.xlane.f32.xlu0 %v695_v15  ;;  %483 = vadd.xlane.f32.xlu1 %v482_v18 }
 0x6a0   :  { %699 = vadd.xlane.f32.xlu1 %v698_v26 }
 0x6a3   :  { %v4197_v29 = vpop.eup %4196 }
 0x6a4   :  { %v4199_v30 = vpop.eup %4198  ;;  %v4610_v31 = vmul.f32 %v4197_v29, %v4499_v22 }
 0x6a5   :  { %v4613_v33 = vmul.f32 %v4199_v30, %v4501_v23 }
 0x6b1   :  { %711 = vrot.lane.b32.xlu1 %v4610_v31, %s4300_s25 }
 0x6b2   :  { %709 = vrot.lane.b32.xlu0 %v4613_v33, %s4300_s25 }
 0x6b5   :  { %495 = vrot.lane.b32.xlu1 %v4613_v33, %s4301_s26 }
 0x6b6   :  { %4134 = vrot.lane.b32.xlu0 %v4509_v25, %s4302_s27 }
 0x6b9   :  { %497 = vrot.lane.b32.xlu1 %v4610_v31, %s4301_s26 }
 0x6ba   :  { %1176 = vrot.lane.b32.xlu0 %v4501_v23, %s4303_s28 }
 0x6bd   :  { %4139 = vrot.lane.b32.xlu1 %v4509_v25, %s4304_s29 }
 0x6c1   :  { %1178 = vrot.lane.b32.xlu1 %v4499_v22, %s4303_s28 }
 0x725   :  { %v481_v23 = vpop.xlane.xlu0 %480 }
 0x726   :  { %v485_v37 = vmul.f32 0.125, %v481_v23 }
 0x728   :  { %v487_v40 = vadd.f32 1e-06, %v485_v37 }
 0x729   :  { %v484_v38 = vpop.xlane.xlu1 %483  ;;  %v697_v39 = vpop.xlane.xlu0 %696 }
 0x72a   :  { %v701_v41 = vmul.f32 0.125, %v697_v39  ;;  %4200 = vrsqrt.f32 %v487_v40  ;;  %v486_v46 = vmul.f32 0.125, %v484_v38 }
 0x72c   :  { %v703_v42 = vadd.f32 1e-06, %v701_v41  ;;  %v488_v62 = vadd.f32 1e-06, %v486_v46 }
 0x72d   :  { %v700_v43 = vpop.xlane.xlu1 %699  ;;  %v710_v44 = vpop.permute.xlu0 %709 }
 0x72e   :  { %v702_v50 = vmul.f32 0.125, %v700_v43  ;;  %4202 = vrsqrt.f32 %v703_v42 }
 0x730   :  { %v704_v52 = vadd.f32 1e-06, %v702_v50 }
 0x731   :  { %v712_v56 = vpop.permute.xlu1 %711  ;;  %v4135_v61 = vpop.permute.xlu0 %4134 }
 0x732   :  { %4204 = vrsqrt.f32 %v704_v52  ;;  %v4137_v29 = vunpack.i.h.bf16 %v4135_v61  ;;  %v4136_v30 = vunpack.i.l.bf16 %v4135_v61 }
 0x733   :  { %4206 = vrsqrt.f32 %v488_v62 }
 0x734   :  { %v4201_v4 = vpop.eup %4200  ;;  %v3937_v43 = vpack.c.bf16 %v4137_v29, %v4136_v30 }
 0x735   :  { %v496_v22 = vpop.permute.xlu1 %495  ;;  %v1177_v2 = vpop.permute.xlu0 %1176  ;;  %v491_v26 = vmul.f32 %v4201_v4, %v4591_v49  ;;  %v4660_v49 = vld [vmem:[%s5090_s2 + $0xa0] sm:$0xff] }
 0x736   :  { %3674 = vmatprep.mubr.msk.f32.mxu1 %vm292_vm1, %v1177_v2 }
 0x737   :  { %v501_v41 = vmul.f32 %v496_v22, %v491_v26 }
 0x738   :  { %v4203_v15 = vpop.eup %4202 }
 0x739   :  { %v498_v18 = vpop.permute.xlu1 %497  ;;  %v707_v19 = vmul.f32 %v4203_v15, %v4589_v47 }
 0x73b   :  { %v715_v10 = vmul.f32 %v710_v44, %v707_v19  ;;  %v4665_v44 = vld [vmem:[%s5090_s2 + $0xa8] sm:$0xff] }
 0x73c   :  { %v4205_v20 = vpop.eup %4204  ;;  %v971_v50 = vmul.f32 %v4565_v7, %v4665_v44  ;;  %v4684_v7 = vld [vmem:[%s5090_s2 + $0x10] sm:$0xff] }
 0x73d   :  { %v708_v28 = vmul.f32 %v4205_v20, %v4595_v58  ;;  %v4140_v23 = vpop.permute.xlu1 %4139  ;;  %3643 = vmatprep.mubr.msk.f32.mxu0 %vm292_vm1, %v715_v10  ;;  %v4207_v40 = vpop.eup %4206 }
 0x73e   :  { %v4142_v37 = vunpack.i.h.bf16 %v4140_v23  ;;  %v4141_v38 = vunpack.i.l.bf16 %v4140_v23  ;;  %v492_v47 = vmul.f32 %v4207_v40, %v4597_v59  ;;  %v970_v59 = vmul.f32 %v4567_v9, %v4660_v49 }
 0x73f   :  { %v716_v39 = vmul.f32 %v712_v56, %v708_v28 }
 0x740   :  { %v3941_v42 = vpack.c.bf16 %v4142_v37, %v4141_v38  ;;  %v502_v58 = vmul.f32 %v498_v18, %v492_v47 }
 0x741   :  { %3644 = vmatmul.mubr.msk.f32.vlgmr.msra.gmra.mrb[8].mxu0 %vm292_vm1, %v716_v39  ;;  %v1179_v46 = vpop.permute.xlu1 %1178 }
 0x742   :  { %3647 = vmatpush3.msra.mxu0 %v4639_v35  ;;  %3648 = vmatprep.mubr.msk.f32.mxu0 %vm292_vm1, %v501_v41 }
 0x743   :  { %3938 = vmatprep.subr.bf16.mxu0 %v3937_v43  ;;  %3943 = vmatprep.subr.msk.bf16.mxu1 %vm4529_vm2, %v3941_v42 }
 0x744   :  { %3946 = vmatpush3.bf16.xpose.msk.msra.mxu1 %vm4529_vm2, %v3941_v42 }
 0x749   :  { %3649 = vmatmul.mubr.msk.f32.vlgmr.msra.gmra.mrb[8].mxu0 %vm292_vm1, %v502_v58 }
 0x74a   :  { %3940 = vmatpush3.bf16.msra.mxu0 %v3937_v43  ;;  %3662 = vmatprep.mubr.msk.f32.mxu0 %vm384_vm3, %v970_v59 }
 0x74b   :  { %3675 = vmatmul.mubr.msk.f32.vlgmr.msra.gmra.mrb[6].mxu1 %vm292_vm1, %v1179_v46  ;;  %3665 = vmatprep.subr.mxu0 %v4684_v7 }
 0x74d   :  { %3663 = vmatmul.mubr.msk.f32.vlgmr.msra.gmra.mrb[10].mxu0 %vm384_vm3, %v971_v50 }
 0x74e   :  { %3666 = vmatpush3.msra.mxu0 %v4684_v7 }
 0x81e   :  { %v3676_v52 = vpop.f32.mrb[6].mxu1 }
 0x81f   :  { %v1258_v56 = vpop.f32.mrb[7].mxu1 }
 0x820   :  { %v3664_v61 = vpop.f32.mrb[10].mxu0 }
 0x821   :  { %v1050_v62 = vpop.f32.mrb[11].mxu0  ;;  %v1062_v22 = vsel %vm292_vm1, %v3664_v61, 0.0 }
 0x822   :  { %1063 = vadd.xlane.f32.xlu1 %v1062_v22  ;;  %v1059_v9 = vsel %vm292_vm1, %v1050_v62, 0.0 }
 0x823   :  { %1060 = vadd.xlane.f32.xlu0 %v1059_v9 }
 0x833   :  { %1087 = vrot.lane.b32.xlu1 %v4610_v31, %s4305_s11 }
 0x837   :  { %4144 = vrot.lane.b32.xlu1 %v4509_v25, %s4306_s17 }
 0x8af   :  { %v1064_v2 = vpop.xlane.xlu1 %1063 }
 0x8b0   :  { %v1066_v4 = vmul.f32 0.125, %v1064_v2  ;;  %v1061_v15 = vpop.xlane.xlu0 %1060  ;;  %v4700_v2 = vld [vmem:[%s5090_s2 + $0xb8] sm:$0xff] }
 0x8b1   :  { %v1065_v18 = vmul.f32 0.125, %v1061_v15  ;;  %v1268_v15 = vmul.f32 %v3676_v52, %v4700_v2 }
 0x8b2   :  { %v1068_v19 = vsub.f32 %v3664_v61, %v1066_v4  ;;  %v4695_v61 = vld [vmem:[%s5090_s2 + $0xb0] sm:$0xff] }
 0x8b3   :  { %v1067_v20 = vsub.f32 %v1050_v62, %v1065_v18  ;;  %v1088_v10 = vpop.permute.xlu1 %1087  ;;  %v1267_v4 = vmul.f32 %v1258_v56, %v4695_v61 }
 0x8b4   :  { %v1070_v26 = vmul.f32 %v1068_v19, %v1068_v19 }
 0x8b5   :  { %v1069_v25 = vmul.f32 %v1067_v20, %v1067_v20 }
 0x8b6   :  { %v1074_v28 = vsel %vm292_vm1, %v1070_v26, 0.0 }
 0x8b7   :  { %v4145_v29 = vpop.permute.xlu1 %4144  ;;  %1075 = vadd.xlane.f32.xlu0 %v1074_v28  ;;  %v1071_v38 = vsel %vm292_vm1, %v1069_v25, 0.0 }
 0x8b8   :  { %v4147_v30 = vunpack.i.h.bf16 %v4145_v29  ;;  %v4146_v23 = vunpack.i.l.bf16 %v4145_v29 }
 0x8ba   :  { %v3947_v37 = vpack.c.bf16 %v4147_v30, %v4146_v23 }
 0x8bb   :  { %1072 = vadd.xlane.f32.xlu0 %v1071_v38 }
 0x8bc   :  { %3948 = vmatprep.subr.bf16.mxu0 %v3947_v37 }
 0x8d1   :  { %1085 = vrot.lane.b32.xlu0 %v4613_v33, %s4305_s11 }
 0x944   :  { %v1076_v39 = vpop.xlane.xlu0 %1075 }
 0x945   :  { %v1078_v40 = vmul.f32 0.125, %v1076_v39 }
 0x947   :  { %v1080_v41 = vadd.f32 1e-06, %v1078_v40 }
 0x948   :  { %v1073_v42 = vpop.xlane.xlu0 %1072 }
 0x949   :  { %v1077_v43 = vmul.f32 0.125, %v1073_v42  ;;  %4208 = vrsqrt.f32 %v1080_v41 }
 0x94b   :  { %v1079_v47 = vadd.f32 1e-06, %v1077_v43 }
 0x94c   :  { %v1086_v62 = vpop.permute.xlu0 %1085 }
 0x94d   :  { %4210 = vrsqrt.f32 %v1079_v47 }
 0x953   :  { %v4209_v58 = vpop.eup %4208 }
 0x954   :  { %v1084_v46 = vmul.f32 %v4209_v58, %v1068_v19 }
 0x956   :  { %v1092_v9 = vmul.f32 %v1088_v10, %v1084_v46 }
 0x957   :  { %v4211_v59 = vpop.eup %4210 }
 0x958   :  { %v1083_v50 = vmul.f32 %v4211_v59, %v1067_v20 }
 0x95a   :  { %v1091_v22 = vmul.f32 %v1086_v62, %v1083_v50 }
 0x95c   :  { %3667 = vmatprep.mubr.msk.f32.mxu0 %vm292_vm1, %v1091_v22 }
 0x95d   :  { %3668 = vmatmul.mubr.msk.f32.vlgmr.msra.gmra.mrb[8].mxu0 %vm292_vm1, %v1092_v9 }
 0x95e   :  { %3950 = vmatpush3.bf16.msra.mxu0 %v3947_v37  ;;  %3681 = vmatprep.mubr.msk.f32.mxu0 %vm384_vm3, %v1267_v4  ;;  %v1477_v4 = vsub.s32 2, %v4344_v5 }
 0x961   :  { %3682 = vmatmul.mubr.msk.f32.vlgmr.msra.gmra.mrb[12].mxu0 %vm384_vm3, %v1268_v15  ;;  %v4727_v15 = vrot.slane %v4349_v6, %v1477_v4 }
 0xa34   :  { %v3683_v18 = vpop.f32.mrb[12].mxu0 }
 0xa35   :  { %v1347_v19 = vpop.f32.mrb[13].mxu0  ;;  %v1359_v20 = vsel %vm292_vm1, %v3683_v18, 0.0 }
 0xa36   :  { %1360 = vadd.xlane.f32.xlu0 %v1359_v20  ;;  %v1356_v10 = vsel %vm292_vm1, %v1347_v19, 0.0 }
 0xa37   :  { %1357 = vadd.xlane.f32.xlu1 %v1356_v10 }
 0xa48   :  { %1382 = vrot.lane.b32.xlu1 %v4613_v33, %s4307_s24  ;;  %v4719_v33 = vld [vmem:[%s5090_s2 + $0x18] sm:$0xff] }
 0xa49   :  { %3684 = vmatprep.subr.mxu0 %v4719_v33 }
 0xa4a   :  { %3685 = vmatpush3.msra.mxu0 %v4719_v33 }
 0xac3   :  { %v1361_v56 = vpop.xlane.xlu0 %1360 }
 0xac4   :  { %v1363_v26 = vmul.f32 0.125, %v1361_v56  ;;  %v1358_v28 = vpop.xlane.xlu1 %1357 }
 0xac5   :  { %v1362_v25 = vmul.f32 0.125, %v1358_v28 }
 0xac6   :  { %v1365_v29 = vsub.f32 %v3683_v18, %v1363_v26 }
 0xac7   :  { %v1364_v52 = vsub.f32 %v1347_v19, %v1362_v25 }
 0xac8   :  { %v1367_v37 = vmul.f32 %v1365_v29, %v1365_v29 }
 0xac9   :  { %v1366_v30 = vmul.f32 %v1364_v52, %v1364_v52 }
 0xaca   :  { %v1371_v38 = vsel %vm292_vm1, %v1367_v37, 0.0 }
 0xacb   :  { %v1368_v23 = vsel %vm292_vm1, %v1366_v30, 0.0 }
 0xacc   :  { %1369 = vadd.xlane.f32.xlu0 %v1368_v23 }
 0xad0   :  { %1372 = vadd.xlane.f32.xlu0 %v1371_v38 }
 0xae6   :  { %1384 = vrot.lane.b32.xlu0 %v4610_v31, %s4307_s24  ;;  %v1383_v31 = vpop.permute.xlu1 %1382 }
 0xb59   :  { %v1370_v39 = vpop.xlane.xlu0 %1369 }
 0xb5a   :  { %v1374_v40 = vmul.f32 0.125, %v1370_v39  ;;  %v44_v39 = vld [vmem:[%s5090_s2 + $0x20] sm:$0xff] }
 0xb5c   :  { %v1376_v41 = vadd.f32 1e-06, %v1374_v40  ;;  %v45_v40 = vld [vmem:[%s5090_s2 + $0x28] sm:$0xff] }
 0xb5d   :  { %v1373_v42 = vpop.xlane.xlu0 %1372 }
 0xb5e   :  { %4212 = vrsqrt.f32 %v1376_v41  ;;  %v1375_v43 = vmul.f32 0.125, %v1373_v42  ;;  %v4753_v41 = vpack.c.bf16 %v45_v40, %v44_v39  ;;  %v46_v42 = vld [vmem:[%s5090_s2 + $0x30] sm:$0xff] }
 0xb60   :  { %v1377_v47 = vadd.f32 1e-06, %v1375_v43  ;;  %3952 = vmatprep.subr.bf16.mxu1 %v4753_v41  ;;  %v47_v43 = vld [vmem:[%s5090_s2 + $0x38] sm:$0xff] }
 0xb61   :  { %v1385_v22 = vpop.permute.xlu0 %1384  ;;  %3954 = vmatpush3.bf16.msra.mxu1 %v4753_v41 }
 0xb62   :  { %4214 = vrsqrt.f32 %v1377_v47  ;;  %v4769_v47 = vpack.c.bf16 %v47_v43, %v46_v42 }
 0xb64   :  { %3956 = vmatprep.subr.bf16.mxu1 %v4769_v47 }
 0xb65   :  { %3958 = vmatpush3.bf16.msra.mxu1 %v4769_v47 }
 0xb66   :  { %3976 = vmatprep.subr.bf16.mxu1 %v4367_v21 }
 0xb68   :  { %v4213_v58 = vpop.eup %4212 }
 0xb69   :  { %v1380_v59 = vmul.f32 %v4213_v58, %v1364_v52 }
 0xb6b   :  { %v1388_v46 = vmul.f32 %v1383_v31, %v1380_v59 }
 0xb6c   :  { %v4215_v50 = vpop.eup %4214 }
 0xb6d   :  { %v1381_v62 = vmul.f32 %v4215_v50, %v1365_v29  ;;  %3686 = vmatprep.mubr.msk.f32.mxu0 %vm292_vm1, %v1388_v46 }
 0xb6f   :  { %v1389_v9 = vmul.f32 %v1385_v22, %v1381_v62 }
 0xb71   :  { %3687 = vmatmul.mubr.msk.f32.vlgmr.msra.gmra.mrb[8].mxu0 %vm292_vm1, %v1389_v9 }
 0xc44   :  { %v3688_v18 = vpop.f32.mrb[8].mxu0 }
 0xc45   :  { %v1474_v19 = vadd.f32 %v3688_v18, %v4338_v1  ;;  %v1462_v20 = vpop.f32.mrb[9].mxu0 }
 0xc46   :  { %v1473_v10 = vadd.f32 %v1462_v20, %v4333_v0 }
 0xc47   :  { %v4732_v56 = vadd.f32 %v4727_v15, %v1474_v19 }
 0xc48   :  { %v4735_v26 = vadd.f32 %v4727_v15, %v1473_v10 }
 0xc49   :  { %v1484_v28 = vsel %vm66_vm0, %v4732_v56, 0.0 }
 0xc4a   :  { %1485 = vadd.xlane.f32.xlu0 %v1484_v28  ;;  %v1481_v5 = vsel %vm66_vm0, %v4735_v26, 0.0 }
 0xc4b   :  { %1482 = vadd.xlane.f32.xlu1 %v1481_v5 }
 0xcd7   :  { %v1486_v6 = vpop.xlane.xlu0 %1485 }
 0xcd8   :  { %v1488_v25 = vmul.f32 0.03125, %v1486_v6  ;;  %v1483_v1 = vpop.xlane.xlu1 %1482 }
 0xcd9   :  { %v1487_v29 = vmul.f32 0.03125, %v1483_v1  ;;  %v49_v1 = vld [vmem:[%s5090_s2 + $0x48] sm:$0xff] }
 0xcda   :  { %v1490_v0 = vsub.f32 %v4732_v56, %v1488_v25  ;;  %v48_v25 = vld [vmem:[%s5090_s2 + $0x40] sm:$0xff] }
 0xcdb   :  { %v1489_v52 = vsub.f32 %v4735_v26, %v1487_v29  ;;  %v4794_v29 = vpack.c.bf16 %v49_v1, %v48_v25 }
 0xcdc   :  { %v1492_v30 = vmul.f32 %v1490_v0, %v1490_v0 }
 0xcdd   :  { %v1491_v23 = vmul.f32 %v1489_v52, %v1489_v52  ;;  %3960 = vmatprep.subr.bf16.mxu0 %v4794_v29 }
 0xcde   :  { %v1496_v37 = vsel %vm66_vm0, %v1492_v30, 0.0  ;;  %3962 = vmatpush3.bf16.msra.mxu0 %v4794_v29  ;;  %v53_v30 = vld [vmem:[%s5090_s2 + $0x68] sm:$0xff] }
 0xcdf   :  { %1497 = vadd.xlane.f32.xlu0 %v1496_v37  ;;  %v1493_v38 = vsel %vm66_vm0, %v1491_v23, 0.0  ;;  %v54_v37 = vld [vmem:[%s5090_s2 + $0x70] sm:$0xff] }
 0xce0   :  { %1494 = vadd.xlane.f32.xlu1 %v1493_v38  ;;  %v55_v38 = vld [vmem:[%s5090_s2 + $0x78] sm:$0xff] }
 0xce1   :  { %v4824_v39 = vpack.c.bf16 %v55_v38, %v54_v37 }
 0xcf1   :  { %1507 = vrot.lane.b32.xlu1 %v4353_v8, %s4296_s13 }
 0xcf5   :  { %1512 = vrot.lane.b32.xlu0 %v4353_v8, %s4301_s26  ;;  %1518 = vrot.lane.b32.xlu1 %v4727_v15, %s4293_s0 }
 0xcf9   :  { %1616 = vrot.lane.b32.xlu1 %v4727_v15, %s4301_s26 }
 0xd6c   :  { %v1498_v58 = vpop.xlane.xlu0 %1497 }
 0xd6d   :  { %v1500_v59 = vmul.f32 0.03125, %v1498_v58  ;;  %v1495_v31 = vpop.xlane.xlu1 %1494 }
 0xd6e   :  { %v1499_v46 = vmul.f32 0.03125, %v1495_v31 }
 0xd6f   :  { %v1502_v50 = vadd.f32 1e-06, %v1500_v59 }
 0xd70   :  { %v1501_v62 = vadd.f32 1e-06, %v1499_v46  ;;  %v4777_v10 = vpop.permute.xlu0 %1512 }
 0xd71   :  { %4216 = vrsqrt.f32 %v1502_v50  ;;  %v4774_v9 = vpop.permute.xlu1 %1507 }
 0xd72   :  { %4218 = vrsqrt.f32 %v1501_v62 }
 0xd75   :  { %v4828_v40 = vpop.permute.xlu1 %1518 }
 0xd79   :  { %v4834_v25 = vpop.permute.xlu1 %1616 }
 0xd7b   :  { %v4217_v22 = vpop.eup %4216 }
 0xd7c   :  { %v4219_v4 = vpop.eup %4218  ;;  %v1506_v18 = vmul.f32 %v4217_v22, %v1490_v0 }
 0xd7d   :  { %v1505_v19 = vmul.f32 %v4219_v4, %v1489_v52  ;;  %v52_v52 = vld [vmem:[%s5090_s2 + $0x60] sm:$0xff] }
 0xd7e   :  { %v1511_v20 = vmul.f32 %v4774_v9, %v1506_v18  ;;  %v4814_v23 = vpack.c.bf16 %v53_v30, %v52_v52 }
 0xd7f   :  { %v1510_v28 = vmul.f32 %v4774_v9, %v1505_v19 }
 0xd80   :  { %v1516_v6 = vadd.f32 %v4777_v10, %v1511_v20 }
 0xd81   :  { %v1515_v5 = vadd.f32 %v4777_v10, %v1510_v28 }
 0xd83   :  { %3697 = vmatprep.mubr.msk.f32.mxu1 %vm66_vm0, %v1515_v5 }
 0xd84   :  { %3698 = vmatmul.mubr.msk.f32.vlgmr.msra.gmra.mrb[8].mxu1 %vm66_vm0, %v1516_v6 }
 0xd85   :  { %3978 = vmatpush3.bf16.msra.mxu1 %v4367_v21  ;;  %v50_v21 = vld [vmem:[%s5090_s2 + $0x50] sm:$0xff] }
 0xd86   :  { %3980 = vmatprep.subr.bf16.mxu1 %v4377_v24 }
 0xd89   :  { %3982 = vmatpush3.bf16.msra.mxu1 %v4377_v24  ;;  %v51_v24 = vld [vmem:[%s5090_s2 + $0x58] sm:$0xff] }
 0xd8a   :  { %3984 = vmatprep.subr.bf16.mxu1 %v4387_v27  ;;  %v4804_v0 = vpack.c.bf16 %v51_v24, %v50_v21 }
 0xd8c   :  { %3964 = vmatprep.subr.bf16.mxu0 %v4804_v0 }
 0xd8d   :  { %3966 = vmatpush3.bf16.msra.mxu0 %v4804_v0 }
 0xd8e   :  { %3968 = vmatprep.subr.bf16.mxu0 %v4814_v23 }
 0xd91   :  { %3970 = vmatpush3.bf16.msra.mxu0 %v4814_v23 }
 0xd92   :  { %3972 = vmatprep.subr.bf16.mxu0 %v4824_v39 }
 0xd95   :  { %3974 = vmatpush3.bf16.msra.mxu0 %v4824_v39 }
 0xe57   :  { %v3699_v42 = vpop.f32.mrb[8].mxu1 }
 0xe58   :  { %v1599_v43 = vadd.f32 %v3699_v42, %v4828_v40  ;;  %v1593_v58 = vpop.f32.mrb[9].mxu1 }
 0xe59   :  { %v1594_v59 = vadd.f32 %v1593_v58, %v4828_v40 }
 0xe5a   :  { %v1603_v31 = vsub.f32 0.0, %v1599_v43 }
 0xe5b   :  { %v1602_v46 = vsub.f32 0.0, %v1594_v59 }
 0xe5c   :  { %v1606_v50 = vmul.f32 1.442695, %v1603_v31 }
 0xe5d   :  { %v1604_v62 = vmul.f32 1.442695, %v1602_v46 }
 0xe5e   :  { %4220 = vpow2.f32 %v1606_v50 }
 0xe5f   :  { %4222 = vpow2.f32 %v1604_v62 }
 0xe68   :  { %v4221_v22 = vpop.eup %4220 }
 0xe69   :  { %v4223_v4 = vpop.eup %4222  ;;  %v1609_v18 = vadd.f32 1.0, %v4221_v22 }
 0xe6a   :  { %v1608_v19 = vadd.f32 1.0, %v4223_v4 }
 0xe6b   :  { %4224 = vrcp.f32 %v1609_v18 }
 0xe6c   :  { %4226 = vrcp.f32 %v1608_v19 }
 0xe75   :  { %v4225_v20 = vpop.eup %4224 }
 0xe76   :  { %v4227_v28 = vpop.eup %4226  ;;  %v1615_v6 = vmul.f32 %v4225_v20, %v1599_v43 }
 0xe77   :  { %v1614_v5 = vmul.f32 %v4227_v28, %v1594_v59 }
 0xe79   :  { %3716 = vmatprep.mubr.msk.f32.mxu0 %vm1619_vm4, %v1614_v5 }
 0xe7a   :  { %3717 = vmatmul.mubr.msk.f32.vlgmr.msra.gmra.mrb[14].mxu0 %vm1619_vm4, %v1615_v6 }
 0xf4d   :  { %v3718_v1 = vpop.f32.mrb[14].mxu0 }
 0xf4e   :  { %v1698_v21 = vadd.f32 %v3718_v1, %v4834_v25  ;;  %v1692_v24 = vpop.f32.mrb[15].mxu0 }
 0xf4f   :  { %v1693_v52 = vadd.f32 %v1692_v24, %v4834_v25 }
 0xf50   :  { %v4839_v30 = vadd.f32 %v1698_v21, %v4732_v56 }
 0xf51   :  { %v4842_v37 = vadd.f32 %v1693_v52, %v4735_v26 }
 0xf52   :  { %v1706_v38 = vsel %vm66_vm0, %v4839_v30, 0.0 }
 0xf53   :  { %1707 = vadd.xlane.f32.xlu0 %v1706_v38  ;;  %v1703_v42 = vsel %vm66_vm0, %v4842_v37, 0.0 }
 0xf54   :  { %1704 = vadd.xlane.f32.xlu1 %v1703_v42 }
 0xfe0   :  { %v1708_v43 = vpop.xlane.xlu0 %1707 }
 0xfe1   :  { %v1710_v58 = vmul.f32 0.03125, %v1708_v43  ;;  %v1705_v59 = vpop.xlane.xlu1 %1704 }
 0xfe2   :  { %v1709_v31 = vmul.f32 0.03125, %v1705_v59 }
 0xfe3   :  { %v1712_v46 = vsub.f32 %v4839_v30, %v1710_v58 }
 0xfe4   :  { %v1711_v56 = vsub.f32 %v4842_v37, %v1709_v31 }
 0xfe5   :  { %v1714_v62 = vmul.f32 %v1712_v46, %v1712_v46 }
 0xfe6   :  { %v1713_v50 = vmul.f32 %v1711_v56, %v1711_v56 }
 0xfe7   :  { %v1718_v22 = vsel %vm66_vm0, %v1714_v62, 0.0 }
 0xfe8   :  { %v1715_v26 = vsel %vm66_vm0, %v1713_v50, 0.0 }
 0xfe9   :  { %1716 = vadd.xlane.f32.xlu0 %v1715_v26 }
 0xfed   :  { %1719 = vadd.xlane.f32.xlu0 %v1718_v22 }
0x1076   :  { %v1717_v4 = vpop.xlane.xlu0 %1716 }
0x1077   :  { %v1721_v18 = vmul.f32 0.03125, %v1717_v4 }
0x1079   :  { %v1723_v19 = vadd.f32 1e-06, %v1721_v18 }
0x107a   :  { %v1720_v20 = vpop.xlane.xlu0 %1719 }
0x107b   :  { %4228 = vrsqrt.f32 %v1723_v19  ;;  %v1722_v28 = vmul.f32 0.03125, %v1720_v20 }
0x107d   :  { %v1724_v5 = vadd.f32 1e-06, %v1722_v28 }
0x107f   :  { %4230 = vrsqrt.f32 %v1724_v5 }
0x1085   :  { %v4229_v6 = vpop.eup %4228 }
0x1086   :  { %v1727_v1 = vmul.f32 %v4229_v6, %v1711_v56 }
0x1088   :  { %v1729_v21 = vmul.f32 %v1727_v1, %v4353_v8 }
0x1089   :  { %v4231_v24 = vpop.eup %4230 }
0x108a   :  { %v1728_v52 = vmul.f32 %v4231_v24, %v1712_v46  ;;  %v1731_v38 = vadd.f32 %v1729_v21, %v4390_v36 }
0x108c   :  { %3727 = vmatprep.mubr.msk.f32.mxu1 %vm66_vm0, %v1731_v38  ;;  %v1730_v42 = vmul.f32 %v1728_v52, %v4353_v8 }
0x108e   :  { %v1732_v43 = vadd.f32 %v1730_v42, %v4390_v36 }
0x1090   :  { %3728 = vmatmul.mubr.msk.f32.vlgmr.msra.gmra.mrb[10].mxu1 %vm66_vm0, %v1732_v43 }
0x1091   :  { %3986 = vmatpush3.bf16.msra.mxu1 %v4387_v27 }
0x1092   :  { %3988 = vmatprep.subr.bf16.mxu1 %v4403_v45 }
0x1095   :  { %3990 = vmatpush3.bf16.msra.mxu1 %v4403_v45 }
0x1096   :  { %3992 = vmatprep.subr.bf16.mxu1 %v4414_v48 }
0x1099   :  { %3994 = vmatpush3.bf16.msra.mxu1 %v4414_v48 }
0x109a   :  { %3996 = vmatprep.subr.bf16.mxu1 %v4424_v51 }
0x109d   :  { %3998 = vmatpush3.bf16.msra.mxu1 %v4424_v51 }
0x109e   :  { %4000 = vmatprep.subr.bf16.mxu1 %v4434_v54 }
0x10a1   :  { %4002 = vmatpush3.bf16.msra.mxu1 %v4434_v54 }
0x10a2   :  { %4004 = vmatprep.subr.bf16.mxu1 %v4444_v57 }
0x10a5   :  { %4006 = vmatpush3.bf16.msra.mxu1 %v4444_v57 }
0x10a6   :  { %4008 = vmatprep.subr.bf16.mxu1 %v4454_v60 }
0x10a9   :  { %4010 = vmatpush3.bf16.msra.mxu1 %v4454_v60 }
0x10aa   :  { %4012 = vmatprep.subr.bf16.mxu1 %v4465_v63 }
0x10ad   :  { %4014 = vmatpush3.bf16.msra.mxu1 %v4465_v63 }
0x1163   :  { %v3729_v8 = vpop.f32.mrb[10].mxu1 }
0x1164   :  { %v1805_v27 = vpop.f32.mrb[11].mxu1  ;;  %v1811_v45 = vadd.f32 %v3729_v8, %v4471_v3 }
0x1165   :  { %v1806_v36 = vadd.f32 %v1805_v27, %v4471_v3 }
0x1166   :  { %v1815_v51 = vmul.f32 %v1811_v45, %v4478_v11 }
0x1167   :  { %3762 = vmatprep.mubr.f32.mxu1 %v1806_v36  ;;  %v1814_v60 = vmul.f32 %v1806_v36, %v4488_v13 }
0x1168   :  { %3763 = vmatmul.mubr.f32.vlgmr.msra.gmra.mrb[12].mxu1 %v1811_v45 }
0x123b   :  { %v3764_v48 = vpop.f32.mrb[12].mxu1 }
0x123c   :  { %v1892_v54 = vmul.f32 %v3764_v48, %v4483_v12  ;;  %v1882_v57 = vpop.f32.mrb[13].mxu1 }
0x123d   :  { %v1891_v58 = vmul.f32 %v1882_v57, %v4493_v14 }
0x123e   :  { %v4879_v59 = vadd.f32 %v1892_v54, %v1815_v51 }
0x123f   :  { %v4881_v63 = vadd.f32 %v1891_v58, %v1814_v60 }
0x1241   :  { %3769 = vmatprep.mubr.msk.f32.mxu0 %vm292_vm1, %v4881_v63  ;;  %v4887_v3 = vpack.i.bf16 %v4879_v59, %v4881_v63 }
0x1243   :  { %4154 = vrot.lane.b32.xlu0 %v4887_v3, %s4296_s13  ;;  %4149 = vrot.lane.b32.xlu1 %v4887_v3, %s4293_s0 }
0x1247   :  { %4164 = vrot.lane.b32.xlu0 %v4887_v3, %s4295_s1  ;;  %4159 = vrot.lane.b32.xlu1 %v4887_v3, %s4298_s15 }
0x124b   :  { %2499 = vrot.lane.b32.xlu0 %v4881_v63, %s4297_s14  ;;  %2123 = vrot.lane.b32.xlu1 %v4881_v63, %s4294_s12 }
0x124f   :  { %2125 = vrot.lane.b32.xlu1 %v4879_v59, %s4294_s12 }
0x1253   :  { %4169 = vrot.lane.b32.xlu1 %v4887_v3, %s4299_s16 }
0x1257   :  { %2501 = vrot.lane.b32.xlu1 %v4879_v59, %s4297_s14 }
0x12b5   :  { %v4155_v11 = vpop.permute.xlu0 %4154  ;;  %v4150_v12 = vpop.permute.xlu1 %4149 }
0x12b6   :  { %v4157_v13 = vunpack.i.h.bf16 %v4155_v11  ;;  %v4156_v14 = vunpack.i.l.bf16 %v4155_v11  ;;  %v4152_v31 = vunpack.i.h.bf16 %v4150_v12  ;;  %v4151_v46 = vunpack.i.l.bf16 %v4150_v12 }
0x12b8   :  { %v4015_v56 = vpack.c.bf16 %v4152_v31, %v4151_v46  ;;  %v4021_v62 = vpack.c.bf16 %v4157_v13, %v4156_v14  ;;  %v1896_v14 = vsub.f32 0.0, %v4879_v59 }
0x12b9   :  { %v4165_v50 = vpop.permute.xlu0 %4164  ;;  %v4160_v26 = vpop.permute.xlu1 %4159 }
0x12ba   :  { %4017 = vmatprep.subr.msk.bf16.mxu0 %vm4529_vm2, %v4015_v56  ;;  %v4162_v18 = vunpack.i.h.bf16 %v4160_v26  ;;  %v4161_v19 = vunpack.i.l.bf16 %v4160_v26  ;;  %v4167_v38 = vunpack.i.h.bf16 %v4165_v50  ;;  %v4166_v42 = vunpack.i.l.bf16 %v4165_v50 }
0x12bb   :  { %4020 = vmatpush3.bf16.xpose.msk.msra.mxu0 %vm4529_vm2, %v4015_v56 }
0x12bc   :  { %4022 = vmatprep.subr.bf16.mxu0 %v4021_v62  ;;  %v4025_v28 = vpack.c.bf16 %v4162_v18, %v4161_v19  ;;  %v4031_v36 = vpack.c.bf16 %v4167_v38, %v4166_v42 }
0x12bd   :  { %v2500_v22 = vpop.permute.xlu0 %2499  ;;  %v2124_v4 = vpop.permute.xlu1 %2123 }
0x12be   :  { %3807 = vmatprep.mubr.msk.f32.mxu1 %vm292_vm1, %v2500_v22 }
0x12c1   :  { %v2126_v20 = vpop.permute.xlu1 %2125 }
0x12c2   :  { %3770 = vmatmul.mubr.msk.f32.vlgmr.msra.gmra.mrb[16].mxu0 %vm292_vm1, %v4879_v59 }
0x12c3   :  { %4024 = vmatpush3.bf16.msra.mxu0 %v4021_v62 }
0x12c4   :  { %4027 = vmatprep.subr.msk.bf16.mxu0 %vm4529_vm2, %v4025_v28 }
0x12c5   :  { %v4170_v5 = vpop.permute.xlu1 %4169 }
0x12c6   :  { %v4172_v6 = vunpack.i.h.bf16 %v4170_v5  ;;  %v4171_v1 = vunpack.i.l.bf16 %v4170_v5 }
0x12c8   :  { %v4035_v21 = vpack.c.bf16 %v4172_v6, %v4171_v1 }
0x12c9   :  { %v2502_v24 = vpop.permute.xlu1 %2501 }
0x12ca   :  { %4037 = vmatprep.subr.msk.bf16.mxu1 %vm4529_vm2, %v4035_v21 }
0x12cb   :  { %4040 = vmatpush3.bf16.xpose.msk.msra.mxu1 %vm4529_vm2, %v4035_v21 }
0x12d2   :  { %3808 = vmatmul.mubr.msk.f32.vlgmr.msra.gmra.mrb[14].mxu1 %vm292_vm1, %v2502_v24 }
0x1395   :  { %v3771_v52 = vpop.f32.mrb[16].mxu0 }
0x1396   :  { %v1989_v43 = vpop.f32.mrb[17].mxu0  ;;  %v1999_v27 = vmul.f32 %v3771_v52, %v4555_v55 }
0x1397   :  { %v1998_v8 = vmul.f32 %v1989_v43, %v4550_v53 }
0x1399   :  { %3776 = vmatprep.mubr.msk.f32.mxu0 %vm384_vm3, %v1998_v8 }
0x139a   :  { %3777 = vmatmul.mubr.msk.f32.vlgmr.msra.gmra.mrb[18].mxu0 %vm384_vm3, %v1999_v27 }
0x139b   :  { %4030 = vmatpush3.bf16.xpose.msk.msra.mxu0 %vm4529_vm2, %v4025_v28  ;;  %3783 = vmatprep.mubr.msk.f32.mxu0 %vm292_vm1, %v2124_v4 }
0x139c   :  { %4032 = vmatprep.subr.bf16.mxu0 %v4031_v36 }
0x13a2   :  { %3784 = vmatmul.mubr.msk.f32.vlgmr.msra.gmra.mrb[20].mxu0 %vm292_vm1, %v2126_v20 }
0x13a3   :  { %4034 = vmatpush3.bf16.msra.mxu0 %v4031_v36 }
0x13a4   :  { %3793 = vmatprep.subr.mxu0 %v4632_v34 }
0x13a5   :  { %v4930_v45 = vpop.f32.mrb[14].mxu1 }
0x13a6   :  { %v4932_v53 = vpop.f32.mrb[15].mxu1 }
0x146d   :  { %v3778_v55 = vpop.f32.mrb[18].mxu0 }
0x146e   :  { %v2078_v48 = vpop.f32.mrb[19].mxu0 }
0x1475   :  { %v3785_v51 = vpop.f32.mrb[20].mxu0 }
0x1476   :  { %v2205_v54 = vpop.f32.mrb[21].mxu0  ;;  %v2215_v60 = vmul.f32 %v3785_v51, %v4577_v17  ;;  %v2090_v17 = vsel %vm292_vm1, %v3778_v55, 0.0 }
0x1477   :  { %v2214_v57 = vmul.f32 %v2205_v54, %v4572_v16  ;;  %v2087_v16 = vsel %vm292_vm1, %v2078_v48, 0.0 }
0x1479   :  { %3790 = vmatprep.mubr.msk.f32.mxu0 %vm384_vm3, %v2214_v57 }
0x147a   :  { %3791 = vmatmul.mubr.msk.f32.vlgmr.msra.gmra.mrb[22].mxu0 %vm384_vm3, %v2215_v60 }
0x147b   :  { %3794 = vmatpush3.msra.mxu0 %v4632_v34  ;;  %v1895_v34 = vsub.f32 0.0, %v4881_v63 }
0x147c   :  { %3798 = vmatprep.subr.mxu0 %v4639_v35  ;;  %v1899_v35 = vmul.f32 1.442695, %v1896_v14 }
0x147d   :  { %v1897_v46 = vmul.f32 1.442695, %v1895_v34 }
0x147e   :  { %4232 = vpow2.f32 %v1899_v35 }
0x147f   :  { %4234 = vpow2.f32 %v1897_v46 }
0x1488   :  { %v4233_v52 = vpop.eup %4232 }
0x1489   :  { %v4235_v8 = vpop.eup %4234  ;;  %v1902_v27 = vadd.f32 1.0, %v4233_v52 }
0x148b   :  { %4236 = vrcp.f32 %v1902_v27 }
0x154d   :  { %v3792_v58 = vpop.f32.mrb[22].mxu0 }
0x154e   :  { %v2294_v11 = vpop.f32.mrb[23].mxu0  ;;  %v2306_v12 = vsel %vm292_vm1, %v3792_v58, 0.0 }
0x154f   :  { %2307 = vadd.xlane.f32.xlu1 %v2306_v12  ;;  %v2303_v13 = vsel %vm292_vm1, %v2294_v11, 0.0 }
0x1550   :  { %2304 = vadd.xlane.f32.xlu0 %v2303_v13 }
0x1554   :  { %2088 = vadd.xlane.f32.xlu0 %v2087_v16 }
0x1558   :  { %2091 = vadd.xlane.f32.xlu0 %v2090_v17 }
0x15dc   :  { %v2308_v50 = vpop.xlane.xlu1 %2307 }
0x15dd   :  { %v2305_v31 = vpop.xlane.xlu0 %2304  ;;  %v2310_v22 = vmul.f32 0.125, %v2308_v50 }
0x15de   :  { %v2309_v56 = vmul.f32 0.125, %v2305_v31 }
0x15df   :  { %v2312_v5 = vsub.f32 %v3792_v58, %v2310_v22 }
0x15e0   :  { %v2311_v4 = vsub.f32 %v2294_v11, %v2309_v56 }
0x15e1   :  { %v2089_v26 = vpop.xlane.xlu0 %2088  ;;  %v2314_v43 = vmul.f32 %v2312_v5, %v2312_v5 }
0x15e2   :  { %v2093_v62 = vmul.f32 0.125, %v2089_v26  ;;  %v2313_v21 = vmul.f32 %v2311_v4, %v2311_v4 }
0x15e3   :  { %v2318_v36 = vsel %vm292_vm1, %v2314_v43, 0.0 }
0x15e4   :  { %v4946_v18 = vsub.f32 %v2078_v48, %v2093_v62  ;;  %v2315_v38 = vsel %vm292_vm1, %v2313_v21, 0.0  ;;  %v4237_v48 = vpop.eup %4236 }
0x15e5   :  { %v2092_v19 = vpop.xlane.xlu0 %2091  ;;  %v4959_v54 = vmul.f32 %v4237_v48, %v4879_v59 }
0x15e6   :  { %v2094_v20 = vmul.f32 0.125, %v2092_v19  ;;  %v2097_v28 = vmul.f32 %v4946_v18, %v4946_v18 }
0x15e8   :  { %v4950_v6 = vsub.f32 %v3778_v55, %v2094_v20  ;;  %v2099_v1 = vsel %vm292_vm1, %v2097_v28, 0.0  ;;  %v1901_v55 = vadd.f32 1.0, %v4235_v8 }
0x15e9   :  { %2100 = vadd.xlane.f32.xlu0 %v2099_v1 }
0x15ea   :  { %v2098_v24 = vmul.f32 %v4950_v6, %v4950_v6  ;;  %4238 = vrcp.f32 %v1901_v55 }
0x15ec   :  { %v2102_v42 = vsel %vm292_vm1, %v2098_v24, 0.0 }
0x15ed   :  { %2316 = vadd.xlane.f32.xlu0 %v2315_v38  ;;  %2103 = vadd.xlane.f32.xlu1 %v2102_v42 }
0x15f1   :  { %2319 = vadd.xlane.f32.xlu1 %v2318_v36 }
0x15f4   :  { %v4239_v51 = vpop.eup %4238 }
0x15f5   :  { %v4962_v57 = vmul.f32 %v4239_v51, %v4881_v63 }
0x1602   :  { %2331 = vrot.lane.b32.xlu1 %v4959_v54, %s4300_s25 }
0x1603   :  { %2329 = vrot.lane.b32.xlu0 %v4962_v57, %s4300_s25 }
0x1606   :  { %2115 = vrot.lane.b32.xlu1 %v4962_v57, %s4301_s26 }
0x1607   :  { %4174 = vrot.lane.b32.xlu0 %v4887_v3, %s4302_s27 }
0x160a   :  { %2117 = vrot.lane.b32.xlu1 %v4959_v54, %s4301_s26 }
0x160b   :  { %2796 = vrot.lane.b32.xlu0 %v4881_v63, %s4303_s28 }
0x160e   :  { %4179 = vrot.lane.b32.xlu1 %v4887_v3, %s4304_s29 }
0x1612   :  { %2798 = vrot.lane.b32.xlu1 %v4879_v59, %s4303_s28 }
0x1676   :  { %v2101_v60 = vpop.xlane.xlu0 %2100 }
0x1677   :  { %v2105_v58 = vmul.f32 0.125, %v2101_v60  ;;  %v2590_v60 = vmul.f32 %v4932_v53, %v4660_v49 }
0x1679   :  { %v2107_v13 = vadd.f32 1e-06, %v2105_v58 }
0x167a   :  { %v2104_v11 = vpop.xlane.xlu1 %2103  ;;  %v2317_v12 = vpop.xlane.xlu0 %2316 }
0x167b   :  { %v2321_v16 = vmul.f32 0.125, %v2317_v12  ;;  %4240 = vrsqrt.f32 %v2107_v13  ;;  %v2106_v31 = vmul.f32 0.125, %v2104_v11 }
0x167d   :  { %v2323_v17 = vadd.f32 1e-06, %v2321_v16  ;;  %v2108_v50 = vadd.f32 1e-06, %v2106_v31 }
0x167e   :  { %v2320_v14 = vpop.xlane.xlu1 %2319  ;;  %v2330_v34 = vpop.permute.xlu0 %2329 }
0x167f   :  { %v2322_v35 = vmul.f32 0.125, %v2320_v14  ;;  %4242 = vrsqrt.f32 %v2323_v17 }
0x1681   :  { %v2324_v63 = vadd.f32 1e-06, %v2322_v35 }
0x1682   :  { %v2332_v46 = vpop.permute.xlu1 %2331  ;;  %v4175_v56 = vpop.permute.xlu0 %4174 }
0x1683   :  { %4244 = vrsqrt.f32 %v2324_v63  ;;  %v4177_v52 = vunpack.i.h.bf16 %v4175_v56  ;;  %v4176_v38 = vunpack.i.l.bf16 %v4175_v56 }
0x1684   :  { %4246 = vrsqrt.f32 %v2108_v50 }
0x1685   :  { %v4241_v62 = vpop.eup %4240  ;;  %v4041_v51 = vpack.c.bf16 %v4177_v52, %v4176_v38 }
0x1686   :  { %v2116_v26 = vpop.permute.xlu1 %2115  ;;  %v2797_v59 = vpop.permute.xlu0 %2796  ;;  %v2111_v21 = vmul.f32 %v4241_v62, %v4946_v18 }
0x1687   :  { %3826 = vmatprep.mubr.msk.f32.mxu1 %vm292_vm1, %v2797_v59 }
0x1688   :  { %v2121_v55 = vmul.f32 %v2116_v26, %v2111_v21 }
0x1689   :  { %v4243_v22 = vpop.eup %4242 }
0x168a   :  { %v2118_v19 = vpop.permute.xlu1 %2117  ;;  %v2327_v20 = vmul.f32 %v4243_v22, %v2311_v4  ;;  %v4268_v4 = vld [vmem:[%s5090_s2] sm:$0xff]  ;;  %s4308_s2 = smov [#allocation2]  }
0x168b   :  { %s3312_s1 = sshll.u32 %s4308_s2, 4  ;;  %s3313_s1 = int_to_ptr.vmem [resolvable:$true] %s3312_s1 }
0x168c   :  { %v2335_v1 = vmul.f32 %v2330_v34, %v2327_v20  ;;  %s4269_s13 = scalar_lea.vmem %s3313_s1, 256  ;;  %p4274_p1 = scmp.lt.s32.totalorder %s3313_s1, %s3313_s1 }
0x168d   :  { %v4245_v28 = vpop.eup %4244  ;;  %p4270_p0 = scmp.ne.s32.totalorder %s3313_s1, %s4269_s13  ;;  %p4275_p2 = scmp.lt.s32.totalorder %s4269_s13, %s4269_s13 }
0x168e   :  { %v2328_v24 = vmul.f32 %v4245_v28, %v2312_v5  ;;  %v4180_v42 = vpop.permute.xlu1 %4179  ;;  %3795 = vmatprep.mubr.msk.f32.mxu0 %vm292_vm1, %v2335_v1  ;;  %v4247_v36 = vpop.eup %4246 }
0x168f   :  { %v4182_v43 = vunpack.i.h.bf16 %v4180_v42  ;;  %v4181_v8 = vunpack.i.l.bf16 %v4180_v42  ;;  %v2112_v18 = vmul.f32 %v4247_v36, %v4950_v6  ;;  %v2591_v6 = vmul.f32 %v4930_v45, %v4665_v44  ;;  %p4276_p3 = por %p4275_p2, %p4274_p1 }
0x1690   :  { %v2336_v27 = vmul.f32 %v2332_v46, %v2328_v24 }
0x1691   :  { %v4045_v48 = vpack.c.bf16 %v4182_v43, %v4181_v8  ;;  %v2122_v5 = vmul.f32 %v2118_v19, %v2112_v18  ;;  %p4277_p4 = pnand %p4276_p3, %p4270_p0 }
0x1692   :  { %3796 = vmatmul.mubr.msk.f32.vlgmr.msra.gmra.mrb[24].mxu0 %vm292_vm1, %v2336_v27  ;;  %v2799_v58 = vpop.permute.xlu1 %2798 }
0x1693   :  { %3799 = vmatpush3.msra.mxu0 %v4268_v4  ;;  %3800 = vmatprep.mubr.msk.f32.mxu0 %vm292_vm1, %v2121_v55 }
0x1694   :  { %4042 = vmatprep.subr.bf16.mxu0 %v4041_v51  ;;  %4047 = vmatprep.subr.msk.bf16.mxu1 %vm4529_vm2, %v4045_v48 }
0x1695   :  { %4050 = vmatpush3.bf16.xpose.msk.msra.mxu1 %vm4529_vm2, %v4045_v48 }
0x1696   :  { %4056 = vmatprep.subr.bf16.mxu1 %v4753_v41 }
0x169a   :  { %3801 = vmatmul.mubr.msk.f32.vlgmr.msra.gmra.mrb[24].mxu0 %vm292_vm1, %v2122_v5 }
0x169b   :  { %4044 = vmatpush3.bf16.msra.mxu0 %v4041_v51  ;;  %3814 = vmatprep.mubr.msk.f32.mxu0 %vm384_vm3, %v2590_v60 }
0x169c   :  { %3827 = vmatmul.mubr.msk.f32.vlgmr.msra.gmra.mrb[16].mxu1 %vm292_vm1, %v2799_v58  ;;  %3817 = vmatprep.subr.mxu0 %v4684_v7 }
0x169d   :  { %4058 = vmatpush3.bf16.msra.mxu1 %v4753_v41 }
0x169e   :  { %3815 = vmatmul.mubr.msk.f32.vlgmr.msra.gmra.mrb[26].mxu0 %vm384_vm3, %v2591_v6  ;;  %4060 = vmatprep.subr.bf16.mxu1 %v4769_v47 }
0x169f   :  { %3818 = vmatpush3.msra.mxu0 %v4684_v7 }
0x16a1   :  { %4062 = vmatpush3.bf16.msra.mxu1 %v4769_v47 }
0x176f   :  { %v3828_v32 = vpop.f32.mrb[16].mxu1 }
0x1770   :  { %v2878_v49 = vpop.f32.mrb[17].mxu1  ;;  %v2888_v43 = vmul.f32 %v3828_v32, %v4700_v2 }
0x1771   :  { %v3816_v53 = vpop.f32.mrb[26].mxu0  ;;  %v2887_v42 = vmul.f32 %v2878_v49, %v4695_v61 }
0x1772   :  { %v2670_v11 = vpop.f32.mrb[27].mxu0  ;;  %v2682_v44 = vsel %vm292_vm1, %v3816_v53, 0.0 }
0x1773   :  { %2683 = vadd.xlane.f32.xlu1 %v2682_v44  ;;  %v2679_v45 = vsel %vm292_vm1, %v2670_v11, 0.0 }
0x1774   :  { %2680 = vadd.xlane.f32.xlu0 %v2679_v45 }
0x1784   :  { %2707 = vrot.lane.b32.xlu1 %v4959_v54, %s4305_s11 }
0x1788   :  { %4184 = vrot.lane.b32.xlu1 %v4887_v3, %s4306_s17 }
0x1800   :  { %v2684_v41 = vpop.xlane.xlu1 %2683 }
0x1801   :  { %v2686_v7 = vmul.f32 0.125, %v2684_v41  ;;  %v2681_v12 = vpop.xlane.xlu0 %2680 }
0x1802   :  { %v2685_v47 = vmul.f32 0.125, %v2681_v12 }
0x1803   :  { %v2688_v13 = vsub.f32 %v3816_v53, %v2686_v7 }
0x1804   :  { %v2687_v16 = vsub.f32 %v2670_v11, %v2685_v47  ;;  %v2708_v17 = vpop.permute.xlu1 %2707 }
0x1805   :  { %v2690_v14 = vmul.f32 %v2688_v13, %v2688_v13 }
0x1806   :  { %v2689_v31 = vmul.f32 %v2687_v16, %v2687_v16 }
0x1807   :  { %v2694_v34 = vsel %vm292_vm1, %v2690_v14, 0.0 }
0x1808   :  { %v4185_v35 = vpop.permute.xlu1 %4184  ;;  %2695 = vadd.xlane.f32.xlu0 %v2694_v34  ;;  %v2691_v50 = vsel %vm292_vm1, %v2689_v31, 0.0 }
0x1809   :  { %v4187_v63 = vunpack.i.h.bf16 %v4185_v35  ;;  %v4186_v46 = vunpack.i.l.bf16 %v4185_v35 }
0x180b   :  { %v4051_v56 = vpack.c.bf16 %v4187_v63, %v4186_v46 }
0x180c   :  { %2692 = vadd.xlane.f32.xlu0 %v2691_v50 }
0x180d   :  { %4052 = vmatprep.subr.bf16.mxu0 %v4051_v56 }
0x1822   :  { %2705 = vrot.lane.b32.xlu0 %v4962_v57, %s4305_s11 }
0x1895   :  { %v2696_v3 = vpop.xlane.xlu0 %2695 }
0x1896   :  { %v2698_v26 = vmul.f32 0.125, %v2696_v3 }
0x1898   :  { %v2700_v59 = vadd.f32 1e-06, %v2698_v26 }
0x1899   :  { %v2693_v62 = vpop.xlane.xlu0 %2692 }
0x189a   :  { %v2697_v22 = vmul.f32 0.125, %v2693_v62  ;;  %4248 = vrsqrt.f32 %v2700_v59 }
0x189c   :  { %v2699_v19 = vadd.f32 1e-06, %v2697_v22 }
0x189d   :  { %v2706_v24 = vpop.permute.xlu0 %2705 }
0x189e   :  { %4250 = vrsqrt.f32 %v2699_v19 }
0x18a4   :  { %v4249_v20 = vpop.eup %4248 }
0x18a5   :  { %v2704_v1 = vmul.f32 %v4249_v20, %v2688_v13 }
0x18a7   :  { %v2712_v38 = vmul.f32 %v2708_v17, %v2704_v1 }
0x18a8   :  { %v4251_v28 = vpop.eup %4250 }
0x18a9   :  { %v2703_v21 = vmul.f32 %v4251_v28, %v2687_v16 }
0x18ab   :  { %v2711_v52 = vmul.f32 %v2706_v24, %v2703_v21 }
0x18ad   :  { %3819 = vmatprep.mubr.msk.f32.mxu0 %vm292_vm1, %v2711_v52 }
0x18ae   :  { %3820 = vmatmul.mubr.msk.f32.vlgmr.msra.gmra.mrb[24].mxu0 %vm292_vm1, %v2712_v38 }
0x18af   :  { %4054 = vmatpush3.bf16.msra.mxu0 %v4051_v56  ;;  %3833 = vmatprep.mubr.msk.f32.mxu0 %vm384_vm3, %v2887_v42 }
0x18b0   :  { %3836 = vmatprep.subr.mxu0 %v4719_v33 }
0x18b2   :  { %3834 = vmatmul.mubr.msk.f32.vlgmr.msra.gmra.mrb[28].mxu0 %vm384_vm3, %v2888_v43 }
0x18b3   :  { %3837 = vmatpush3.msra.mxu0 %v4719_v33 }
0x18b4   :  { %4064 = vmatprep.subr.bf16.mxu0 %v4794_v29 }
0x1985   :  { %v3835_v8 = vpop.f32.mrb[28].mxu0 }
0x1986   :  { %v2967_v27 = vpop.f32.mrb[29].mxu0  ;;  %v2979_v61 = vsel %vm292_vm1, %v3835_v8, 0.0 }
0x1987   :  { %2980 = vadd.xlane.f32.xlu0 %v2979_v61  ;;  %v2976_v36 = vsel %vm292_vm1, %v2967_v27, 0.0 }
0x1988   :  { %2977 = vadd.xlane.f32.xlu1 %v2976_v36 }
0x1999   :  { %3002 = vrot.lane.b32.xlu1 %v4962_v57, %s4307_s24 }
0x1a14   :  { %v2981_v2 = vpop.xlane.xlu0 %2980 }
0x1a15   :  { %v2983_v55 = vmul.f32 0.125, %v2981_v2  ;;  %v2978_v48 = vpop.xlane.xlu1 %2977 }
0x1a16   :  { %v2982_v51 = vmul.f32 0.125, %v2978_v48 }
0x1a17   :  { %v2985_v4 = vsub.f32 %v3835_v8, %v2983_v55 }
0x1a18   :  { %v2984_v18 = vsub.f32 %v2967_v27, %v2982_v51 }
0x1a19   :  { %v2987_v60 = vmul.f32 %v2985_v4, %v2985_v4  ;;  %v3003_v41 = vpop.permute.xlu1 %3002 }
0x1a1a   :  { %v2986_v33 = vmul.f32 %v2984_v18, %v2984_v18 }
0x1a1b   :  { %v2991_v58 = vsel %vm292_vm1, %v2987_v60, 0.0 }
0x1a1c   :  { %v2988_v5 = vsel %vm292_vm1, %v2986_v33, 0.0 }
0x1a1d   :  { %2989 = vadd.xlane.f32.xlu0 %v2988_v5 }
0x1a21   :  { %2992 = vadd.xlane.f32.xlu0 %v2991_v58 }
0x1a37   :  { %3004 = vrot.lane.b32.xlu0 %v4959_v54, %s4307_s24 }
0x1aaa   :  { %v2990_v6 = vpop.xlane.xlu0 %2989 }
0x1aab   :  { %v2994_v32 = vmul.f32 0.125, %v2990_v6 }
0x1aad   :  { %v2996_v57 = vadd.f32 1e-06, %v2994_v32 }
0x1aae   :  { %v2993_v49 = vpop.xlane.xlu0 %2992 }
0x1aaf   :  { %4252 = vrsqrt.f32 %v2996_v57  ;;  %v2995_v53 = vmul.f32 0.125, %v2993_v49 }
0x1ab1   :  { %v2997_v11 = vadd.f32 1e-06, %v2995_v53 }
0x1ab2   :  { %v3005_v13 = vpop.permute.xlu0 %3004 }
0x1ab3   :  { %4254 = vrsqrt.f32 %v2997_v11 }
0x1ab9   :  { %v4253_v44 = vpop.eup %4252 }
0x1aba   :  { %v3000_v45 = vmul.f32 %v4253_v44, %v2984_v18 }
0x1abc   :  { %v3008_v7 = vmul.f32 %v3003_v41, %v3000_v45 }
0x1abd   :  { %v4255_v12 = vpop.eup %4254 }
0x1abe   :  { %v3001_v47 = vmul.f32 %v4255_v12, %v2985_v4  ;;  %3838 = vmatprep.mubr.msk.f32.mxu0 %vm292_vm1, %v3008_v7 }
0x1ac0   :  { %v3009_v16 = vmul.f32 %v3005_v13, %v3001_v47 }
0x1ac2   :  { %3839 = vmatmul.mubr.msk.f32.vlgmr.msra.gmra.mrb[24].mxu0 %vm292_vm1, %v3009_v16 }
0x1ac3   :  { %4066 = vmatpush3.bf16.msra.mxu0 %v4794_v29 }
0x1ac4   :  { %4068 = vmatprep.subr.bf16.mxu0 %v4804_v0 }
0x1ac7   :  { %4070 = vmatpush3.bf16.msra.mxu0 %v4804_v0 }
0x1ac8   :  { %4072 = vmatprep.subr.bf16.mxu0 %v4814_v23 }
0x1acb   :  { %4074 = vmatpush3.bf16.msra.mxu0 %v4814_v23 }
0x1acc   :  { %4076 = vmatprep.subr.bf16.mxu0 %v4824_v39 }
0x1acf   :  { %4078 = vmatpush3.bf16.msra.mxu0 %v4824_v39 }
0x1b95   :  { %v3840_v54 = vpop.f32.mrb[24].mxu0 }
0x1b96   :  { %v3094_v17 = vadd.f32 %v3840_v54, %v4839_v30  ;;  %v3082_v14 = vpop.f32.mrb[25].mxu0 }
0x1b97   :  { %v3093_v34 = vadd.f32 %v3082_v14, %v4842_v37 }
0x1b98   :  { %v5046_v29 = vadd.f32 %v3094_v17, %v4727_v15 }
0x1b99   :  { %v5049_v31 = vadd.f32 %v3093_v34, %v4727_v15 }
0x1b9a   :  { %v3100_v0 = vsel %vm66_vm0, %v5046_v29, 0.0 }
0x1b9b   :  { %3101 = vadd.xlane.f32.xlu0 %v3100_v0  ;;  %v3097_v23 = vsel %vm66_vm0, %v5049_v31, 0.0 }
0x1b9c   :  { %3098 = vadd.xlane.f32.xlu1 %v3097_v23 }
0x1c28   :  { %v3102_v39 = vpop.xlane.xlu0 %3101 }
0x1c29   :  { %v3104_v35 = vmul.f32 0.03125, %v3102_v39  ;;  %v3099_v30 = vpop.xlane.xlu1 %3098 }
0x1c2a   :  { %v3103_v63 = vmul.f32 0.03125, %v3099_v30 }
0x1c2b   :  { %v3106_v37 = vsub.f32 %v5046_v29, %v3104_v35 }
0x1c2c   :  { %v3105_v46 = vsub.f32 %v5049_v31, %v3103_v63 }
0x1c2d   :  { %v3108_v56 = vmul.f32 %v3106_v37, %v3106_v37 }
0x1c2e   :  { %v3107_v50 = vmul.f32 %v3105_v46, %v3105_v46 }
0x1c2f   :  { %v3112_v15 = vsel %vm66_vm0, %v3108_v56, 0.0 }
0x1c30   :  { %3113 = vadd.xlane.f32.xlu0 %v3112_v15  ;;  %v3109_v3 = vsel %vm66_vm0, %v3107_v50, 0.0 }
0x1c31   :  { %3110 = vadd.xlane.f32.xlu1 %v3109_v3 }
0x1cbd   :  { %v3114_v26 = vpop.xlane.xlu0 %3113 }
0x1cbe   :  { %v3116_v59 = vmul.f32 0.03125, %v3114_v26  ;;  %v3111_v62 = vpop.xlane.xlu1 %3110 }
0x1cbf   :  { %v3115_v22 = vmul.f32 0.03125, %v3111_v62 }
0x1cc0   :  { %v3118_v19 = vadd.f32 1e-06, %v3116_v59 }
0x1cc1   :  { %v3117_v20 = vadd.f32 1e-06, %v3115_v22 }
0x1cc2   :  { %4256 = vrsqrt.f32 %v3118_v19 }
0x1cc3   :  { %4258 = vrsqrt.f32 %v3117_v20 }
0x1ccc   :  { %v4257_v28 = vpop.eup %4256 }
0x1ccd   :  { %v4259_v1 = vpop.eup %4258  ;;  %v3122_v21 = vmul.f32 %v4257_v28, %v3106_v37 }
0x1cce   :  { %v3121_v24 = vmul.f32 %v4259_v1, %v3105_v46 }
0x1ccf   :  { %v3124_v52 = vmul.f32 %v3122_v21, %v4774_v9 }
0x1cd0   :  { %v3123_v38 = vmul.f32 %v3121_v24, %v4774_v9 }
0x1cd1   :  { %v3126_v43 = vadd.f32 %v3124_v52, %v4777_v10 }
0x1cd2   :  { %v3125_v42 = vadd.f32 %v3123_v38, %v4777_v10 }
0x1cd4   :  { %3849 = vmatprep.mubr.msk.f32.mxu1 %vm66_vm0, %v3125_v42 }
0x1cd5   :  { %3850 = vmatmul.mubr.msk.f32.vlgmr.msra.gmra.mrb[18].mxu1 %vm66_vm0, %v3126_v43 }
0x1da8   :  { %v3851_v8 = vpop.f32.mrb[18].mxu1 }
0x1da9   :  { %v3205_v27 = vadd.f32 %v3851_v8, %v4828_v40  ;;  %v3199_v61 = vpop.f32.mrb[19].mxu1 }
0x1daa   :  { %v3200_v36 = vadd.f32 %v3199_v61, %v4828_v40 }
0x1dab   :  { %v3209_v2 = vsub.f32 0.0, %v3205_v27 }
0x1dac   :  { %v3208_v55 = vsub.f32 0.0, %v3200_v36 }
0x1dad   :  { %v3212_v48 = vmul.f32 1.442695, %v3209_v2 }
0x1dae   :  { %v3210_v51 = vmul.f32 1.442695, %v3208_v55 }
0x1daf   :  { %4260 = vpow2.f32 %v3212_v48 }
0x1db0   :  { %4262 = vpow2.f32 %v3210_v51 }
0x1db9   :  { %v4261_v9 = vpop.eup %4260 }
0x1dba   :  { %v4263_v4 = vpop.eup %4262  ;;  %v3215_v18 = vadd.f32 1.0, %v4261_v9 }
0x1dbb   :  { %v3214_v10 = vadd.f32 1.0, %v4263_v4 }
0x1dbc   :  { %4264 = vrcp.f32 %v3215_v18 }
0x1dbd   :  { %4266 = vrcp.f32 %v3214_v10 }
0x1dc6   :  { %v4265_v33 = vpop.eup %4264 }
0x1dc7   :  { %v4267_v5 = vpop.eup %4266  ;;  %v3221_v58 = vmul.f32 %v4265_v33, %v3205_v27 }
0x1dc8   :  { %v3220_v60 = vmul.f32 %v4267_v5, %v3200_v36 }
0x1dca   :  { %3868 = vmatprep.mubr.msk.f32.mxu0 %vm1619_vm4, %v3220_v60 }
0x1dcb   :  { %3869 = vmatmul.mubr.msk.f32.vlgmr.msra.gmra.mrb[30].mxu0 %vm1619_vm4, %v3221_v58 }
0x1e9e   :  { %v3870_v40 = vpop.f32.mrb[30].mxu0 }
0x1e9f   :  { %v3300_v6 = vadd.f32 %v3870_v40, %v4834_v25  ;;  %v3294_v32 = vpop.f32.mrb[31].mxu0 }
0x1ea0   :  { %v3295_v57 = vadd.f32 %v3294_v32, %v4834_v25 }
0x1ea1   :  { %v3304_v49 = vadd.f32 %v3300_v6, %v5046_v29 }
0x1ea2   :  { %v3303_v53 = vadd.f32 %v3295_v57, %v5049_v31 }
0x1ea3   :  { %3306 = vst.msk [vmem:[#allocation2 + $0x8] sm:$0xff] %vm66_vm0, %v3304_v49 }
0x1ea4   :  { %3305 = vst.msk [vmem:[#allocation2] sm:$0xff] %vm66_vm0, %v3303_v53 }
0x1ea5   :  { %4280 = shalt.err (!%p4277_p4)
}
0x1ea6   :  { %s4281_s16 = scalar_lea.hbm %s5091_s3, 256 }
0x1ea7   :  { %p4282_p5 = scmp.ne.s32.totalorder %s5091_s3, %s4281_s16  ;;  %p4285_p6 = scmp.lt.u32.totalorder %s4281_s16, %s5091_s3 }
0x1ea9   :  { %p4287_p7 = pnand %p4285_p6, %p4282_p5 }
0x1eab   :  { %4290 = shalt.err (!%p4287_p7)
}
0x1eac   :  { %s4309_s29 = smov 128  }
0x1ead   :  { %3318 = dma.vmem_to_hbm [thread:$0]  %s3313_s1, 256, %s5091_s3, [#allocation3], %s4309_s29, %s4309_s29, %s4307_s24  }
0x1eae   :  { %4291 = dma.done.wait [#allocation3], 256  }
0x1eaf   :  { %4292 = vsyncadd [#allocation3], 4294967040 }
0x1eb0   :  { %3322 = vsyncpa [#allocation3], 1 }

</bundles_post_ra>
